<compile_context>
chip_gen: v7x
topology: tpu7x:2x2x1
jax: 0.10.0
libtpu: 0.0.40
codegen_flags: <defaults>
</compile_context>

<pallas_src>
import functools

import jax
import jax.numpy as jnp
from jax.experimental import pallas as pl
from jax.experimental.pallas import tpu as pltpu

LANE = 128  # TPU vreg lane width; all hidden/output lane dims are padded to this.


def _vmem_spec():
    return pl.BlockSpec(memory_space=pltpu.MemorySpace.VMEM)


# --------------------------------------------------------------------------
# The single fused kernel
# --------------------------------------------------------------------------
def _fused_han_gl_kernel(*refs, num_feats, num_types, length):
    it = iter(refs)
    feat_refs = [next(it) for _ in range(num_feats)]   # (N_i, D_i)
    fw_refs = [next(it) for _ in range(num_feats)]     # (D_i, LANE)
    fb_refs = [next(it) for _ in range(num_feats)]     # (1, LANE)
    ns_refs = [next(it) for _ in range(num_types)]     # (S_t, N0, 1) int32
    att_refs = [next(it) for _ in range(num_types)]    # (1, LANE)
    sem_w_ref, sem_b_ref, sem_q_ref = next(it), next(it), next(it)
    ho_w_ref, ho_b_ref = next(it), next(it)
    adj_ref = next(it)                                  # (N0, N0)
    w2_ref, b2_ref = next(it), next(it)                 # (3*LANE, LANE), (1, LANE)
    wp_ref, bp_ref = next(it), next(it)                 # (LANE, LANE), (1, LANE)
    logits_ref, h4_ref = next(it), next(it)             # (N0, LANE) each

    # ---- 1) feature mapping: h[i] = features[i] @ W_i + b_i (dropout = id) ----
    h = []
    for i in range(num_feats):
        h.append(
            jnp.dot(feat_refs[i][...], fw_refs[i][...],
                    preferred_element_type=jnp.float32) + fb_refs[i][...])
    n0 = h[0].shape[0]

    # ---- 2) NetSchema: intra-type neighbour attention ------------------------
    # Gather h[t+1][NS[t][:, s]] via a one-hot MXU matmul built from the indices
    # (h[t+1] stays resident in VMEM; no (N, S, H) tensor ever hits HBM).
    z_types = []
    for t in range(num_types):
        h_nei = h[t + 1]                                # (M_t, LANE)
        m_t = h_nei.shape[0]
        att = att_refs[t][...]                          # (1, LANE)
        n_slots = ns_refs[t].shape[0]
        lane_ids = jax.lax.broadcasted_iota(jnp.int32, (n0, m_t), 1)
        nei, score = [], []
        for s in range(n_slots):                        # static, tiny trip count
            col = ns_refs[t][s]                         # (N0, 1) int32
            sel = jnp.where(col == lane_ids, 1.0, 0.0)  # (N0, M_t) one-hot
            nei_s = jnp.dot(sel, h_nei, preferred_element_type=jnp.float32)
            sc_s = jnp.sum(nei_s * att, axis=-1, keepdims=True)   # (N0, 1)
            sc_s = jnp.where(sc_s > 0, sc_s, 0.2 * sc_s)          # LeakyReLU(0.2)
            nei.append(nei_s)
            score.append(sc_s)
        # softmax over the S_t neighbour slots, per target node (all (N,1) math,
        # no lane-concat / reshapes needed).
        m = score[0]
        for s in range(1, n_slots):
            m = jnp.maximum(m, score[s])
        exps = [jnp.exp(sc - m) for sc in score]
        denom = exps[0]
        for s in range(1, n_slots):
            denom = denom + exps[s]
        inv = 1.0 / denom
        z_t = (exps[0] * inv) * nei[0]
        for s in range(1, n_slots):
            z_t = z_t + (exps[s] * inv) * nei[s]
        z_types.append(z_t)                             # (N0, LANE)

    # ---- 3) NetSchema: inter-type (semantic) attention ------------------------
    sem_w = sem_w_ref[...]
    sem_b = sem_b_ref[...]
    sem_q = sem_q_ref[...]
    z_cat = jnp.concatenate(z_types, axis=0)            # (T*N0, LANE), one matmul
    e_all = jnp.tanh(
        jnp.dot(z_cat, sem_w, preferred_element_type=jnp.float32) + sem_b)
    w_row = jnp.sum(e_all * sem_q, axis=-1, keepdims=True)          # (T*N0, 1)
    w_t = []
    for t in range(num_types):
        w_t.append(
            jnp.sum(w_row[t * n0:(t + 1) * n0], axis=0, keepdims=True)
            * (1.0 / n0))                                           # (1, 1)
    wm = w_t[0]
    for t in range(1, num_types):
        wm = jnp.maximum(wm, w_t[t])
    wexp = [jnp.exp(w - wm) for w in w_t]
    wden = wexp[0]
    for t in range(1, num_types):
        wden = wden + wexp[t]
    winv = 1.0 / wden
    h2 = (wexp[0] * winv) * z_types[0]
    for t in range(1, num_types):
        h2 = h2 + (wexp[t] * winv) * z_types[t]                     # (N0, LANE)

    # ---- 4) Higorder: (1/L) * sum_{k=1..L} ADJ^k h0, then Linear + ReLU -------
    adj = adj_ref[...]
    zk = h[0]
    acc = jnp.zeros_like(zk)
    for _ in range(length):                             # static, small trip count
        zk = jnp.dot(adj, zk, preferred_element_type=jnp.float32)
        acc = acc + zk
    acc = acc * (1.0 / float(length))
    h3 = jnp.maximum(
        jnp.dot(acc, ho_w_ref[...], preferred_element_type=jnp.float32)
        + ho_b_ref[...], 0.0)                                       # (N0, LANE)

    # ---- 5) head: h4 = cat([h0, h2, h3]) @ W2 + b2 ; logits = h4 @ Wp + bp ----
    h_cat = jnp.concatenate([h[0], h2, h3], axis=1)     # (N0, 3*LANE), single K=3H dot
    h4 = (jnp.dot(h_cat, w2_ref[...], preferred_element_type=jnp.float32)
          + b2_ref[...])
    h4_ref[...] = h4
    logits_ref[...] = (
        jnp.dot(h4, wp_ref[...], preferred_element_type=jnp.float32) + bp_ref[...])


# --------------------------------------------------------------------------
# Parameters (logical sizes) + one-time lane padding to LANE=128
# --------------------------------------------------------------------------
def init_params(key, input_dim, hid_dim, nei_num, outsize):
    p = {}
    keys = jax.random.split(key, 16)
    p["feat_w"] = [
        0.1 * jax.random.normal(keys[i], (d, hid_dim), jnp.float32)
        for i, d in enumerate(input_dim)
    ]
    p["feat_b"] = [
        0.01 * jax.random.normal(keys[3 + i], (hid_dim,), jnp.float32)
        for i in range(len(input_dim))
    ]
    p["intra_att"] = [
        0.1 * jax.random.normal(keys[6 + t], (hid_dim,), jnp.float32)
        for t in range(nei_num)
    ]
    p["sem_w"] = 0.1 * jax.random.normal(keys[9], (hid_dim, hid_dim), jnp.float32)
    p["sem_b"] = 0.01 * jax.random.normal(keys[10], (hid_dim,), jnp.float32)
    p["sem_q"] = 0.1 * jax.random.normal(keys[11], (hid_dim,), jnp.float32)
    p["ho_w"] = 0.1 * jax.random.normal(keys[12], (hid_dim, hid_dim), jnp.float32)
    p["ho_b"] = 0.01 * jax.random.normal(keys[13], (hid_dim,), jnp.float32)
    p["pred2_w"] = 0.1 * jax.random.normal(keys[14], (3 * hid_dim, hid_dim), jnp.float32)
    p["pred2_b"] = jnp.zeros((hid_dim,), jnp.float32)
    p["pred_w"] = 0.1 * jax.random.normal(keys[15], (hid_dim, outsize), jnp.float32)
    p["pred_b"] = jnp.zeros((outsize,), jnp.float32)
    return p


def pad_params(p, hid_dim, outsize):
    """Zero-pad all weight/bias lane dims to LANE once so every block is lane-dense."""
    assert hid_dim <= LANE and outsize <= LANE

    def pad_cols(x):
        return jnp.pad(x, ((0, 0), (0, LANE - x.shape[1])))

    def pad_bias(b):
        return jnp.pad(b.reshape(1, -1), ((0, 0), (0, LANE - b.shape[0])))

    out = {}
    out["feat_w"] = [pad_cols(w) for w in p["feat_w"]]
    out["feat_b"] = [pad_bias(b) for b in p["feat_b"]]
    out["intra_att"] = [pad_bias(a) for a in p["intra_att"]]
    out["sem_w"] = jnp.zeros((LANE, LANE), jnp.float32).at[:hid_dim, :hid_dim].set(p["sem_w"])
    out["sem_b"] = pad_bias(p["sem_b"])
    out["sem_q"] = pad_bias(p["sem_q"])
    out["ho_w"] = jnp.zeros((LANE, LANE), jnp.float32).at[:hid_dim, :hid_dim].set(p["ho_w"])
    out["ho_b"] = pad_bias(p["ho_b"])
    # concat order in the head is [h0, h2, h3] -> three LANE-wide row blocks of W2.
    w2 = jnp.zeros((3 * LANE, LANE), jnp.float32)
    for blk in range(3):
        w2 = w2.at[blk * LANE:blk * LANE + hid_dim, :hid_dim].set(
            p["pred2_w"][blk * hid_dim:(blk + 1) * hid_dim])
    out["pred2_w"] = w2
    out["pred2_b"] = pad_bias(p["pred2_b"])
    out["pred_w"] = jnp.zeros((LANE, LANE), jnp.float32).at[:hid_dim, :outsize].set(p["pred_w"])
    out["pred_b"] = pad_bias(p["pred_b"])
    return out


# --------------------------------------------------------------------------
# Wrapper: one pallas_call for the whole forward
# --------------------------------------------------------------------------
def han_gl_forward(padded, features, NS, ADJ, *, length, hid_dim, outsize):
    n0 = features[0].shape[0]
    num_feats = len(features)
    num_types = len(NS)

    # Tiny index preprocessing: (N0, S_t) int -> (S_t, N0, 1) int32 columns.
    ns_cols = [jnp.transpose(ns.astype(jnp.int32), (1, 0))[:, :, None] for ns in NS]

    inputs = (
        list(features)
        + padded["feat_w"] + padded["feat_b"]
        + ns_cols + padded["intra_att"]
        + [padded["sem_w"], padded["sem_b"], padded["sem_q"],
           padded["ho_w"], padded["ho_b"], ADJ,
           padded["pred2_w"], padded["pred2_b"],
           padded["pred_w"], padded["pred_b"]]
    )

    kernel = functools.partial(
        _fused_han_gl_kernel,
        num_feats=num_feats, num_types=num_types, length=length)

    logits_p, h4_p = pl.pallas_call(
        kernel,
        out_shape=(jax.ShapeDtypeStruct((n0, LANE), jnp.float32),
                   jax.ShapeDtypeStruct((n0, LANE), jnp.float32)),
        in_specs=[_vmem_spec()] * len(inputs),
        out_specs=(_vmem_spec(), _vmem_spec()),
        cost_estimate=pl.CostEstimate(
            flops=2_100_000, transcendentals=2_500, bytes_accessed=420_000),
    )(*inputs)

    return logits_p[:, :outsize], h4_p[:, :hid_dim]


# --------------------------------------------------------------------------
# Pure-JAX reference (unpadded) for a correctness cross-check
# --------------------------------------------------------------------------
def reference_forward(params, features, NS, ADJ, length):
    hi = jax.lax.Precision.HIGHEST
    dot = lambda a, b: jnp.dot(a, b, precision=hi)
    h = [dot(features[i], params["feat_w"][i]) + params["feat_b"][i]
         for i in range(len(features))]
    z_types = []
    for t, idx in enumerate(NS):
        nei = jnp.take(h[t + 1], idx, axis=0)                   # (N, S, H)
        att = params["intra_att"][t]
        s = jnp.sum(nei * att, axis=-1)
        s = jnp.where(s > 0, s, 0.2 * s)
        alpha = jax.nn.softmax(s, axis=-1)
        z_types.append(jnp.sum(alpha[:, :, None] * nei, axis=1))
    z = jnp.stack(z_types, axis=0)                              # (T, N, H)
    e = jnp.tanh(jnp.einsum("tnh,hk->tnk", z, params["sem_w"], precision=hi)
                 + params["sem_b"])
    w = jnp.mean(jnp.sum(e * params["sem_q"], axis=-1), axis=1)  # (T,)
    beta = jax.nn.softmax(w)
    h2 = jnp.sum(beta[:, None, None] * z, axis=0)
    zk = h[0]
    acc = jnp.zeros_like(zk)
    for _ in range(length):
        zk = dot(ADJ, zk)
        acc = acc + zk
    acc = acc / length
    h3 = jnp.maximum(dot(acc, params["ho_w"]) + params["ho_b"], 0.0)
    h4 = dot(jnp.concatenate([h[0], h2, h3], axis=1), params["pred2_w"]) + params["pred2_b"]
    logits = dot(h4, params["pred_w"]) + params["pred_b"]
    return logits, h4


if __name__ == "__main__":
    # Small synthetic problem consistent with the module's constructor.
    input_dim = [7, 5, 6]          # 3 node types (target + 2 neighbour types)
    hid_dim = 32
    sample_rate = [3, 4]
    nei_num = 2
    length = 3
    outsize = 4
    num_nodes = [8, 10, 12]        # nodes per type; num_nodes[0] = target nodes

    key = jax.random.PRNGKey(0)
    k_feat, k_ns, k_adj, k_param = jax.random.split(key, 4)

    fkeys = jax.random.split(k_feat, len(input_dim))
    features = [
        jax.random.normal(fkeys[i], (num_nodes[i], input_dim[i]), jnp.float32)
        for i in range(len(input_dim))
    ]

    nskeys = jax.random.split(k_ns, nei_num)
    NS = [
        jax.random.randint(nskeys[t], (num_nodes[0], sample_rate[t]), 0, num_nodes[t + 1])
        for t in range(nei_num)
    ]

    adj_raw = jax.random.uniform(k_adj, (num_nodes[0], num_nodes[0]), jnp.float32)
    ADJ = adj_raw / jnp.sum(adj_raw, axis=1, keepdims=True)   # row-normalized

    params = init_params(k_param, input_dim, hid_dim, nei_num, outsize)
    padded = pad_params(params, hid_dim, outsize)

    logits, h4 = han_gl_forward(padded, features, NS, ADJ,
                                length=length, hid_dim=hid_dim, outsize=outsize)
    ref_logits, ref_h4 = reference_forward(params, features, NS, ADJ, length)
    jax.block_until_ready((logits, h4, ref_logits, ref_h4))

    assert logits.shape == (num_nodes[0], outsize)
    assert h4.shape == (num_nodes[0], hid_dim)
    assert jnp.allclose(logits, ref_logits, atol=1e-2, rtol=1e-2)
    assert jnp.allclose(h4, ref_h4, atol=1e-2, rtol=1e-2)
    print("KERNEL_OK")
</pallas_src>

<mosaic_0001>
module attributes {stable_mosaic.version = 11 : i64} {
  func.func @_fused_han_gl_kernel(%arg0: memref<8x7xf32, #tpu.memory_space<vmem>>, %arg1: memref<10x5xf32, #tpu.memory_space<vmem>>, %arg2: memref<12x6xf32, #tpu.memory_space<vmem>>, %arg3: memref<7x128xf32, #tpu.memory_space<vmem>>, %arg4: memref<5x128xf32, #tpu.memory_space<vmem>>, %arg5: memref<6x128xf32, #tpu.memory_space<vmem>>, %arg6: memref<1x128xf32, #tpu.memory_space<vmem>>, %arg7: memref<1x128xf32, #tpu.memory_space<vmem>>, %arg8: memref<1x128xf32, #tpu.memory_space<vmem>>, %arg9: memref<3x8x1xi32, #tpu.memory_space<vmem>>, %arg10: memref<4x8x1xi32, #tpu.memory_space<vmem>>, %arg11: memref<1x128xf32, #tpu.memory_space<vmem>>, %arg12: memref<1x128xf32, #tpu.memory_space<vmem>>, %arg13: memref<128x128xf32, #tpu.memory_space<vmem>>, %arg14: memref<1x128xf32, #tpu.memory_space<vmem>>, %arg15: memref<1x128xf32, #tpu.memory_space<vmem>>, %arg16: memref<128x128xf32, #tpu.memory_space<vmem>>, %arg17: memref<1x128xf32, #tpu.memory_space<vmem>>, %arg18: memref<8x8xf32, #tpu.memory_space<vmem>>, %arg19: memref<384x128xf32, #tpu.memory_space<vmem>>, %arg20: memref<1x128xf32, #tpu.memory_space<vmem>>, %arg21: memref<128x128xf32, #tpu.memory_space<vmem>>, %arg22: memref<1x128xf32, #tpu.memory_space<vmem>>, %arg23: memref<8x128xf32, #tpu.memory_space<vmem>>, %arg24: memref<8x128xf32, #tpu.memory_space<vmem>>) attributes {dimension_semantics = [], scalar_prefetch = 0 : i64, scratch_operands = 0 : i64, tpu.core_type = #tpu.core_type<tc>} {
    %c0 = arith.constant 0 : index
    %c0_0 = arith.constant 0 : index
    %0 = vector.load %arg0[%c0, %c0_0] : memref<8x7xf32, #tpu.memory_space<vmem>>, vector<8x7xf32>
    %c0_1 = arith.constant 0 : index
    %c0_2 = arith.constant 0 : index
    %1 = vector.load %arg3[%c0_1, %c0_2] : memref<7x128xf32, #tpu.memory_space<vmem>>, vector<7x128xf32>
    %cst = arith.constant dense<0.000000e+00> : vector<8x128xf32>
    %2 = tpu.matmul %0, %1, %cst {dimension_numbers = #tpu.dot_dimension_numbers<[1], [0], [0], [1], [0, 0, 1, 1], [], []>} : vector<8x7xf32>, vector<7x128xf32>, vector<8x128xf32> -> vector<8x128xf32>
    %c0_3 = arith.constant 0 : index
    %c0_4 = arith.constant 0 : index
    %3 = vector.load %arg6[%c0_3, %c0_4] : memref<1x128xf32, #tpu.memory_space<vmem>>, vector<1x128xf32>
    %4 = vector.broadcast %3 : vector<1x128xf32> to vector<8x128xf32>
    %5 = arith.addf %2, %4 : vector<8x128xf32>
    %c0_5 = arith.constant 0 : index
    %c0_6 = arith.constant 0 : index
    %6 = vector.load %arg1[%c0_5, %c0_6] : memref<10x5xf32, #tpu.memory_space<vmem>>, vector<10x5xf32>
    %c0_7 = arith.constant 0 : index
    %c0_8 = arith.constant 0 : index
    %7 = vector.load %arg4[%c0_7, %c0_8] : memref<5x128xf32, #tpu.memory_space<vmem>>, vector<5x128xf32>
    %cst_9 = arith.constant dense<0.000000e+00> : vector<10x128xf32>
    %8 = tpu.matmul %6, %7, %cst_9 {dimension_numbers = #tpu.dot_dimension_numbers<[1], [0], [0], [1], [0, 0, 1, 1], [], []>} : vector<10x5xf32>, vector<5x128xf32>, vector<10x128xf32> -> vector<10x128xf32>
    %c0_10 = arith.constant 0 : index
    %c0_11 = arith.constant 0 : index
    %9 = vector.load %arg7[%c0_10, %c0_11] : memref<1x128xf32, #tpu.memory_space<vmem>>, vector<1x128xf32>
    %10 = vector.broadcast %9 : vector<1x128xf32> to vector<10x128xf32>
    %11 = arith.addf %8, %10 : vector<10x128xf32>
    %c0_12 = arith.constant 0 : index
    %c0_13 = arith.constant 0 : index
    %12 = vector.load %arg2[%c0_12, %c0_13] : memref<12x6xf32, #tpu.memory_space<vmem>>, vector<12x6xf32>
    %c0_14 = arith.constant 0 : index
    %c0_15 = arith.constant 0 : index
    %13 = vector.load %arg5[%c0_14, %c0_15] : memref<6x128xf32, #tpu.memory_space<vmem>>, vector<6x128xf32>
    %cst_16 = arith.constant dense<0.000000e+00> : vector<12x128xf32>
    %14 = tpu.matmul %12, %13, %cst_16 {dimension_numbers = #tpu.dot_dimension_numbers<[1], [0], [0], [1], [0, 0, 1, 1], [], []>} : vector<12x6xf32>, vector<6x128xf32>, vector<12x128xf32> -> vector<12x128xf32>
    %c0_17 = arith.constant 0 : index
    %c0_18 = arith.constant 0 : index
    %15 = vector.load %arg8[%c0_17, %c0_18] : memref<1x128xf32, #tpu.memory_space<vmem>>, vector<1x128xf32>
    %16 = vector.broadcast %15 : vector<1x128xf32> to vector<12x128xf32>
    %17 = arith.addf %14, %16 : vector<12x128xf32>
    %c0_19 = arith.constant 0 : index
    %c0_20 = arith.constant 0 : index
    %18 = vector.load %arg11[%c0_19, %c0_20] : memref<1x128xf32, #tpu.memory_space<vmem>>, vector<1x128xf32>
    %19 = tpu.iota {dimensions = array<i32: 1>} : vector<8x10xi32>
    %c0_21 = arith.constant 0 : index
    %c0_22 = arith.constant 0 : index
    %c0_23 = arith.constant 0 : index
    %20 = vector.load %arg9[%c0_21, %c0_22, %c0_23] : memref<3x8x1xi32, #tpu.memory_space<vmem>>, vector<1x8x1xi32>
    %21 = vector.shape_cast %20 : vector<1x8x1xi32> to vector<8x1xi32>
    %22 = vector.broadcast %21 : vector<8x1xi32> to vector<8x10xi32>
    %23 = arith.cmpi eq, %22, %19 : vector<8x10xi32>
    %cst_24 = arith.constant 1.000000e+00 : f32
    %cst_25 = arith.constant 0.000000e+00 : f32
    %24 = vector.broadcast %cst_24 : f32 to vector<8x10xf32>
    %25 = vector.broadcast %cst_25 : f32 to vector<8x10xf32>
    %26 = arith.select %23, %24, %25 : vector<8x10xi1>, vector<8x10xf32>
    %cst_26 = arith.constant dense<0.000000e+00> : vector<8x128xf32>
    %27 = tpu.matmul %26, %11, %cst_26 {dimension_numbers = #tpu.dot_dimension_numbers<[1], [0], [0], [1], [0, 0, 1, 1], [], []>} : vector<8x10xf32>, vector<10x128xf32>, vector<8x128xf32> -> vector<8x128xf32>
    %28 = vector.broadcast %18 : vector<1x128xf32> to vector<8x128xf32>
    %29 = arith.mulf %27, %28 : vector<8x128xf32>
    %cst_27 = arith.constant dense<0.000000e+00> : vector<8xf32>
    %30 = vector.multi_reduction <add>, %29, %cst_27 [1] : vector<8x128xf32> to vector<8xf32>
    %31 = vector.shape_cast %30 : vector<8xf32> to vector<8x1xf32>
    %cst_28 = arith.constant 0.000000e+00 : f32
    %32 = vector.broadcast %cst_28 : f32 to vector<8x1xf32>
    %33 = arith.cmpf ogt, %31, %32 : vector<8x1xf32>
    %cst_29 = arith.constant 2.000000e-01 : f32
    %34 = vector.broadcast %cst_29 : f32 to vector<8x1xf32>
    %35 = arith.mulf %34, %31 : vector<8x1xf32>
    %36 = arith.select %33, %31, %35 : vector<8x1xi1>, vector<8x1xf32>
    %c1 = arith.constant 1 : index
    %c0_30 = arith.constant 0 : index
    %c0_31 = arith.constant 0 : index
    %37 = vector.load %arg9[%c1, %c0_30, %c0_31] : memref<3x8x1xi32, #tpu.memory_space<vmem>>, vector<1x8x1xi32>
    %38 = vector.shape_cast %37 : vector<1x8x1xi32> to vector<8x1xi32>
    %39 = vector.broadcast %38 : vector<8x1xi32> to vector<8x10xi32>
    %40 = arith.cmpi eq, %39, %19 : vector<8x10xi32>
    %cst_32 = arith.constant 1.000000e+00 : f32
    %cst_33 = arith.constant 0.000000e+00 : f32
    %41 = vector.broadcast %cst_32 : f32 to vector<8x10xf32>
    %42 = vector.broadcast %cst_33 : f32 to vector<8x10xf32>
    %43 = arith.select %40, %41, %42 : vector<8x10xi1>, vector<8x10xf32>
    %cst_34 = arith.constant dense<0.000000e+00> : vector<8x128xf32>
    %44 = tpu.matmul %43, %11, %cst_34 {dimension_numbers = #tpu.dot_dimension_numbers<[1], [0], [0], [1], [0, 0, 1, 1], [], []>} : vector<8x10xf32>, vector<10x128xf32>, vector<8x128xf32> -> vector<8x128xf32>
    %45 = vector.broadcast %18 : vector<1x128xf32> to vector<8x128xf32>
    %46 = arith.mulf %44, %45 : vector<8x128xf32>
    %cst_35 = arith.constant dense<0.000000e+00> : vector<8xf32>
    %47 = vector.multi_reduction <add>, %46, %cst_35 [1] : vector<8x128xf32> to vector<8xf32>
    %48 = vector.shape_cast %47 : vector<8xf32> to vector<8x1xf32>
    %cst_36 = arith.constant 0.000000e+00 : f32
    %49 = vector.broadcast %cst_36 : f32 to vector<8x1xf32>
    %50 = arith.cmpf ogt, %48, %49 : vector<8x1xf32>
    %cst_37 = arith.constant 2.000000e-01 : f32
    %51 = vector.broadcast %cst_37 : f32 to vector<8x1xf32>
    %52 = arith.mulf %51, %48 : vector<8x1xf32>
    %53 = arith.select %50, %48, %52 : vector<8x1xi1>, vector<8x1xf32>
    %c2 = arith.constant 2 : index
    %c0_38 = arith.constant 0 : index
    %c0_39 = arith.constant 0 : index
    %54 = vector.load %arg9[%c2, %c0_38, %c0_39] : memref<3x8x1xi32, #tpu.memory_space<vmem>>, vector<1x8x1xi32>
    %55 = vector.shape_cast %54 : vector<1x8x1xi32> to vector<8x1xi32>
    %56 = vector.broadcast %55 : vector<8x1xi32> to vector<8x10xi32>
    %57 = arith.cmpi eq, %56, %19 : vector<8x10xi32>
    %cst_40 = arith.constant 1.000000e+00 : f32
    %cst_41 = arith.constant 0.000000e+00 : f32
    %58 = vector.broadcast %cst_40 : f32 to vector<8x10xf32>
    %59 = vector.broadcast %cst_41 : f32 to vector<8x10xf32>
    %60 = arith.select %57, %58, %59 : vector<8x10xi1>, vector<8x10xf32>
    %cst_42 = arith.constant dense<0.000000e+00> : vector<8x128xf32>
    %61 = tpu.matmul %60, %11, %cst_42 {dimension_numbers = #tpu.dot_dimension_numbers<[1], [0], [0], [1], [0, 0, 1, 1], [], []>} : vector<8x10xf32>, vector<10x128xf32>, vector<8x128xf32> -> vector<8x128xf32>
    %62 = vector.broadcast %18 : vector<1x128xf32> to vector<8x128xf32>
    %63 = arith.mulf %61, %62 : vector<8x128xf32>
    %cst_43 = arith.constant dense<0.000000e+00> : vector<8xf32>
    %64 = vector.multi_reduction <add>, %63, %cst_43 [1] : vector<8x128xf32> to vector<8xf32>
    %65 = vector.shape_cast %64 : vector<8xf32> to vector<8x1xf32>
    %cst_44 = arith.constant 0.000000e+00 : f32
    %66 = vector.broadcast %cst_44 : f32 to vector<8x1xf32>
    %67 = arith.cmpf ogt, %65, %66 : vector<8x1xf32>
    %cst_45 = arith.constant 2.000000e-01 : f32
    %68 = vector.broadcast %cst_45 : f32 to vector<8x1xf32>
    %69 = arith.mulf %68, %65 : vector<8x1xf32>
    %70 = arith.select %67, %65, %69 : vector<8x1xi1>, vector<8x1xf32>
    %71 = arith.maximumf %36, %53 : vector<8x1xf32>
    %72 = arith.maximumf %71, %70 : vector<8x1xf32>
    %73 = arith.subf %36, %72 : vector<8x1xf32>
    %74 = math.exp %73 : vector<8x1xf32>
    %75 = arith.subf %53, %72 : vector<8x1xf32>
    %76 = math.exp %75 : vector<8x1xf32>
    %77 = arith.subf %70, %72 : vector<8x1xf32>
    %78 = math.exp %77 : vector<8x1xf32>
    %79 = arith.addf %74, %76 : vector<8x1xf32>
    %80 = arith.addf %79, %78 : vector<8x1xf32>
    %cst_46 = arith.constant 1.000000e+00 : f32
    %81 = vector.broadcast %cst_46 : f32 to vector<8x1xf32>
    %82 = arith.divf %81, %80 : vector<8x1xf32>
    %83 = arith.mulf %74, %82 : vector<8x1xf32>
    %84 = vector.broadcast %83 : vector<8x1xf32> to vector<8x128xf32>
    %85 = arith.mulf %84, %27 : vector<8x128xf32>
    %86 = arith.mulf %76, %82 : vector<8x1xf32>
    %87 = vector.broadcast %86 : vector<8x1xf32> to vector<8x128xf32>
    %88 = arith.mulf %87, %44 : vector<8x128xf32>
    %89 = arith.addf %85, %88 : vector<8x128xf32>
    %90 = arith.mulf %78, %82 : vector<8x1xf32>
    %91 = vector.broadcast %90 : vector<8x1xf32> to vector<8x128xf32>
    %92 = arith.mulf %91, %61 : vector<8x128xf32>
    %93 = arith.addf %89, %92 : vector<8x128xf32>
    %c0_47 = arith.constant 0 : index
    %c0_48 = arith.constant 0 : index
    %94 = vector.load %arg12[%c0_47, %c0_48] : memref<1x128xf32, #tpu.memory_space<vmem>>, vector<1x128xf32>
    %95 = tpu.iota {dimensions = array<i32: 1>} : vector<8x12xi32>
    %c0_49 = arith.constant 0 : index
    %c0_50 = arith.constant 0 : index
    %c0_51 = arith.constant 0 : index
    %96 = vector.load %arg10[%c0_49, %c0_50, %c0_51] : memref<4x8x1xi32, #tpu.memory_space<vmem>>, vector<1x8x1xi32>
    %97 = vector.shape_cast %96 : vector<1x8x1xi32> to vector<8x1xi32>
    %98 = vector.broadcast %97 : vector<8x1xi32> to vector<8x12xi32>
    %99 = arith.cmpi eq, %98, %95 : vector<8x12xi32>
    %cst_52 = arith.constant 1.000000e+00 : f32
    %cst_53 = arith.constant 0.000000e+00 : f32
    %100 = vector.broadcast %cst_52 : f32 to vector<8x12xf32>
    %101 = vector.broadcast %cst_53 : f32 to vector<8x12xf32>
    %102 = arith.select %99, %100, %101 : vector<8x12xi1>, vector<8x12xf32>
    %cst_54 = arith.constant dense<0.000000e+00> : vector<8x128xf32>
    %103 = tpu.matmul %102, %17, %cst_54 {dimension_numbers = #tpu.dot_dimension_numbers<[1], [0], [0], [1], [0, 0, 1, 1], [], []>} : vector<8x12xf32>, vector<12x128xf32>, vector<8x128xf32> -> vector<8x128xf32>
    %104 = vector.broadcast %94 : vector<1x128xf32> to vector<8x128xf32>
    %105 = arith.mulf %103, %104 : vector<8x128xf32>
    %cst_55 = arith.constant dense<0.000000e+00> : vector<8xf32>
    %106 = vector.multi_reduction <add>, %105, %cst_55 [1] : vector<8x128xf32> to vector<8xf32>
    %107 = vector.shape_cast %106 : vector<8xf32> to vector<8x1xf32>
    %cst_56 = arith.constant 0.000000e+00 : f32
    %108 = vector.broadcast %cst_56 : f32 to vector<8x1xf32>
    %109 = arith.cmpf ogt, %107, %108 : vector<8x1xf32>
    %cst_57 = arith.constant 2.000000e-01 : f32
    %110 = vector.broadcast %cst_57 : f32 to vector<8x1xf32>
    %111 = arith.mulf %110, %107 : vector<8x1xf32>
    %112 = arith.select %109, %107, %111 : vector<8x1xi1>, vector<8x1xf32>
    %c1_58 = arith.constant 1 : index
    %c0_59 = arith.constant 0 : index
    %c0_60 = arith.constant 0 : index
    %113 = vector.load %arg10[%c1_58, %c0_59, %c0_60] : memref<4x8x1xi32, #tpu.memory_space<vmem>>, vector<1x8x1xi32>
    %114 = vector.shape_cast %113 : vector<1x8x1xi32> to vector<8x1xi32>
    %115 = vector.broadcast %114 : vector<8x1xi32> to vector<8x12xi32>
    %116 = arith.cmpi eq, %115, %95 : vector<8x12xi32>
    %cst_61 = arith.constant 1.000000e+00 : f32
    %cst_62 = arith.constant 0.000000e+00 : f32
    %117 = vector.broadcast %cst_61 : f32 to vector<8x12xf32>
    %118 = vector.broadcast %cst_62 : f32 to vector<8x12xf32>
    %119 = arith.select %116, %117, %118 : vector<8x12xi1>, vector<8x12xf32>
    %cst_63 = arith.constant dense<0.000000e+00> : vector<8x128xf32>
    %120 = tpu.matmul %119, %17, %cst_63 {dimension_numbers = #tpu.dot_dimension_numbers<[1], [0], [0], [1], [0, 0, 1, 1], [], []>} : vector<8x12xf32>, vector<12x128xf32>, vector<8x128xf32> -> vector<8x128xf32>
    %121 = vector.broadcast %94 : vector<1x128xf32> to vector<8x128xf32>
    %122 = arith.mulf %120, %121 : vector<8x128xf32>
    %cst_64 = arith.constant dense<0.000000e+00> : vector<8xf32>
    %123 = vector.multi_reduction <add>, %122, %cst_64 [1] : vector<8x128xf32> to vector<8xf32>
    %124 = vector.shape_cast %123 : vector<8xf32> to vector<8x1xf32>
    %cst_65 = arith.constant 0.000000e+00 : f32
    %125 = vector.broadcast %cst_65 : f32 to vector<8x1xf32>
    %126 = arith.cmpf ogt, %124, %125 : vector<8x1xf32>
    %cst_66 = arith.constant 2.000000e-01 : f32
    %127 = vector.broadcast %cst_66 : f32 to vector<8x1xf32>
    %128 = arith.mulf %127, %124 : vector<8x1xf32>
    %129 = arith.select %126, %124, %128 : vector<8x1xi1>, vector<8x1xf32>
    %c2_67 = arith.constant 2 : index
    %c0_68 = arith.constant 0 : index
    %c0_69 = arith.constant 0 : index
    %130 = vector.load %arg10[%c2_67, %c0_68, %c0_69] : memref<4x8x1xi32, #tpu.memory_space<vmem>>, vector<1x8x1xi32>
    %131 = vector.shape_cast %130 : vector<1x8x1xi32> to vector<8x1xi32>
    %132 = vector.broadcast %131 : vector<8x1xi32> to vector<8x12xi32>
    %133 = arith.cmpi eq, %132, %95 : vector<8x12xi32>
    %cst_70 = arith.constant 1.000000e+00 : f32
    %cst_71 = arith.constant 0.000000e+00 : f32
    %134 = vector.broadcast %cst_70 : f32 to vector<8x12xf32>
    %135 = vector.broadcast %cst_71 : f32 to vector<8x12xf32>
    %136 = arith.select %133, %134, %135 : vector<8x12xi1>, vector<8x12xf32>
    %cst_72 = arith.constant dense<0.000000e+00> : vector<8x128xf32>
    %137 = tpu.matmul %136, %17, %cst_72 {dimension_numbers = #tpu.dot_dimension_numbers<[1], [0], [0], [1], [0, 0, 1, 1], [], []>} : vector<8x12xf32>, vector<12x128xf32>, vector<8x128xf32> -> vector<8x128xf32>
    %138 = vector.broadcast %94 : vector<1x128xf32> to vector<8x128xf32>
    %139 = arith.mulf %137, %138 : vector<8x128xf32>
    %cst_73 = arith.constant dense<0.000000e+00> : vector<8xf32>
    %140 = vector.multi_reduction <add>, %139, %cst_73 [1] : vector<8x128xf32> to vector<8xf32>
    %141 = vector.shape_cast %140 : vector<8xf32> to vector<8x1xf32>
    %cst_74 = arith.constant 0.000000e+00 : f32
    %142 = vector.broadcast %cst_74 : f32 to vector<8x1xf32>
    %143 = arith.cmpf ogt, %141, %142 : vector<8x1xf32>
    %cst_75 = arith.constant 2.000000e-01 : f32
    %144 = vector.broadcast %cst_75 : f32 to vector<8x1xf32>
    %145 = arith.mulf %144, %141 : vector<8x1xf32>
    %146 = arith.select %143, %141, %145 : vector<8x1xi1>, vector<8x1xf32>
    %c3 = arith.constant 3 : index
    %c0_76 = arith.constant 0 : index
    %c0_77 = arith.constant 0 : index
    %147 = vector.load %arg10[%c3, %c0_76, %c0_77] : memref<4x8x1xi32, #tpu.memory_space<vmem>>, vector<1x8x1xi32>
    %148 = vector.shape_cast %147 : vector<1x8x1xi32> to vector<8x1xi32>
    %149 = vector.broadcast %148 : vector<8x1xi32> to vector<8x12xi32>
    %150 = arith.cmpi eq, %149, %95 : vector<8x12xi32>
    %cst_78 = arith.constant 1.000000e+00 : f32
    %cst_79 = arith.constant 0.000000e+00 : f32
    %151 = vector.broadcast %cst_78 : f32 to vector<8x12xf32>
    %152 = vector.broadcast %cst_79 : f32 to vector<8x12xf32>
    %153 = arith.select %150, %151, %152 : vector<8x12xi1>, vector<8x12xf32>
    %cst_80 = arith.constant dense<0.000000e+00> : vector<8x128xf32>
    %154 = tpu.matmul %153, %17, %cst_80 {dimension_numbers = #tpu.dot_dimension_numbers<[1], [0], [0], [1], [0, 0, 1, 1], [], []>} : vector<8x12xf32>, vector<12x128xf32>, vector<8x128xf32> -> vector<8x128xf32>
    %155 = vector.broadcast %94 : vector<1x128xf32> to vector<8x128xf32>
    %156 = arith.mulf %154, %155 : vector<8x128xf32>
    %cst_81 = arith.constant dense<0.000000e+00> : vector<8xf32>
    %157 = vector.multi_reduction <add>, %156, %cst_81 [1] : vector<8x128xf32> to vector<8xf32>
    %158 = vector.shape_cast %157 : vector<8xf32> to vector<8x1xf32>
    %cst_82 = arith.constant 0.000000e+00 : f32
    %159 = vector.broadcast %cst_82 : f32 to vector<8x1xf32>
    %160 = arith.cmpf ogt, %158, %159 : vector<8x1xf32>
    %cst_83 = arith.constant 2.000000e-01 : f32
    %161 = vector.broadcast %cst_83 : f32 to vector<8x1xf32>
    %162 = arith.mulf %161, %158 : vector<8x1xf32>
    %163 = arith.select %160, %158, %162 : vector<8x1xi1>, vector<8x1xf32>
    %164 = arith.maximumf %112, %129 : vector<8x1xf32>
    %165 = arith.maximumf %164, %146 : vector<8x1xf32>
    %166 = arith.maximumf %165, %163 : vector<8x1xf32>
    %167 = arith.subf %112, %166 : vector<8x1xf32>
    %168 = math.exp %167 : vector<8x1xf32>
    %169 = arith.subf %129, %166 : vector<8x1xf32>
    %170 = math.exp %169 : vector<8x1xf32>
    %171 = arith.subf %146, %166 : vector<8x1xf32>
    %172 = math.exp %171 : vector<8x1xf32>
    %173 = arith.subf %163, %166 : vector<8x1xf32>
    %174 = math.exp %173 : vector<8x1xf32>
    %175 = arith.addf %168, %170 : vector<8x1xf32>
    %176 = arith.addf %175, %172 : vector<8x1xf32>
    %177 = arith.addf %176, %174 : vector<8x1xf32>
    %cst_84 = arith.constant 1.000000e+00 : f32
    %178 = vector.broadcast %cst_84 : f32 to vector<8x1xf32>
    %179 = arith.divf %178, %177 : vector<8x1xf32>
    %180 = arith.mulf %168, %179 : vector<8x1xf32>
    %181 = vector.broadcast %180 : vector<8x1xf32> to vector<8x128xf32>
    %182 = arith.mulf %181, %103 : vector<8x128xf32>
    %183 = arith.mulf %170, %179 : vector<8x1xf32>
    %184 = vector.broadcast %183 : vector<8x1xf32> to vector<8x128xf32>
    %185 = arith.mulf %184, %120 : vector<8x128xf32>
    %186 = arith.addf %182, %185 : vector<8x128xf32>
    %187 = arith.mulf %172, %179 : vector<8x1xf32>
    %188 = vector.broadcast %187 : vector<8x1xf32> to vector<8x128xf32>
    %189 = arith.mulf %188, %137 : vector<8x128xf32>
    %190 = arith.addf %186, %189 : vector<8x128xf32>
    %191 = arith.mulf %174, %179 : vector<8x1xf32>
    %192 = vector.broadcast %191 : vector<8x1xf32> to vector<8x128xf32>
    %193 = arith.mulf %192, %154 : vector<8x128xf32>
    %194 = arith.addf %190, %193 : vector<8x128xf32>
    %c0_85 = arith.constant 0 : index
    %c0_86 = arith.constant 0 : index
    %195 = vector.load %arg13[%c0_85, %c0_86] : memref<128x128xf32, #tpu.memory_space<vmem>>, vector<128x128xf32>
    %c0_87 = arith.constant 0 : index
    %c0_88 = arith.constant 0 : index
    %196 = vector.load %arg14[%c0_87, %c0_88] : memref<1x128xf32, #tpu.memory_space<vmem>>, vector<1x128xf32>
    %c0_89 = arith.constant 0 : index
    %c0_90 = arith.constant 0 : index
    %197 = vector.load %arg15[%c0_89, %c0_90] : memref<1x128xf32, #tpu.memory_space<vmem>>, vector<1x128xf32>
    %198 = tpu.concatenate %93, %194 in 0 : vector<8x128xf32>, vector<8x128xf32> -> vector<16x128xf32>
    %cst_91 = arith.constant dense<0.000000e+00> : vector<16x128xf32>
    %199 = tpu.matmul %198, %195, %cst_91 {dimension_numbers = #tpu.dot_dimension_numbers<[1], [0], [0], [1], [0, 0, 1, 1], [], []>} : vector<16x128xf32>, vector<128x128xf32>, vector<16x128xf32> -> vector<16x128xf32>
    %200 = vector.broadcast %196 : vector<1x128xf32> to vector<16x128xf32>
    %201 = arith.addf %199, %200 : vector<16x128xf32>
    %202 = math.tanh %201 : vector<16x128xf32>
    %203 = vector.broadcast %197 : vector<1x128xf32> to vector<16x128xf32>
    %204 = arith.mulf %202, %203 : vector<16x128xf32>
    %cst_92 = arith.constant dense<0.000000e+00> : vector<16xf32>
    %205 = vector.multi_reduction <add>, %204, %cst_92 [1] : vector<16x128xf32> to vector<16xf32>
    %206 = vector.shape_cast %205 : vector<16xf32> to vector<16x1xf32>
    %207 = vector.extract_strided_slice %206 {offsets = [0, 0], sizes = [8, 1], strides = [1, 1]} : vector<16x1xf32> to vector<8x1xf32>
    %cst_93 = arith.constant dense<0.000000e+00> : vector<1xf32>
    %208 = vector.multi_reduction <add>, %207, %cst_93 [0] : vector<8x1xf32> to vector<1xf32>
    %209 = vector.shape_cast %208 : vector<1xf32> to vector<1x1xf32>
    %cst_94 = arith.constant 1.250000e-01 : f32
    %210 = vector.broadcast %cst_94 : f32 to vector<1x1xf32>
    %211 = arith.mulf %209, %210 : vector<1x1xf32>
    %212 = vector.extract_strided_slice %206 {offsets = [8, 0], sizes = [8, 1], strides = [1, 1]} : vector<16x1xf32> to vector<8x1xf32>
    %cst_95 = arith.constant dense<0.000000e+00> : vector<1xf32>
    %213 = vector.multi_reduction <add>, %212, %cst_95 [0] : vector<8x1xf32> to vector<1xf32>
    %214 = vector.shape_cast %213 : vector<1xf32> to vector<1x1xf32>
    %cst_96 = arith.constant 1.250000e-01 : f32
    %215 = vector.broadcast %cst_96 : f32 to vector<1x1xf32>
    %216 = arith.mulf %214, %215 : vector<1x1xf32>
    %217 = arith.maximumf %211, %216 : vector<1x1xf32>
    %218 = arith.subf %211, %217 : vector<1x1xf32>
    %219 = math.exp %218 : vector<1x1xf32>
    %220 = arith.subf %216, %217 : vector<1x1xf32>
    %221 = math.exp %220 : vector<1x1xf32>
    %222 = arith.addf %219, %221 : vector<1x1xf32>
    %cst_97 = arith.constant 1.000000e+00 : f32
    %223 = vector.broadcast %cst_97 : f32 to vector<1x1xf32>
    %224 = arith.divf %223, %222 : vector<1x1xf32>
    %225 = arith.mulf %219, %224 : vector<1x1xf32>
    %226 = vector.broadcast %225 : vector<1x1xf32> to vector<8x128xf32>
    %227 = arith.mulf %226, %93 : vector<8x128xf32>
    %228 = arith.mulf %221, %224 : vector<1x1xf32>
    %229 = vector.broadcast %228 : vector<1x1xf32> to vector<8x128xf32>
    %230 = arith.mulf %229, %194 : vector<8x128xf32>
    %231 = arith.addf %227, %230 : vector<8x128xf32>
    %c0_98 = arith.constant 0 : index
    %c0_99 = arith.constant 0 : index
    %232 = vector.load %arg18[%c0_98, %c0_99] : memref<8x8xf32, #tpu.memory_space<vmem>>, vector<8x8xf32>
    %cst_100 = arith.constant 0.000000e+00 : f32
    %233 = vector.broadcast %cst_100 : f32 to vector<8x128xf32>
    %cst_101 = arith.constant dense<0.000000e+00> : vector<8x128xf32>
    %234 = tpu.matmul %232, %5, %cst_101 {dimension_numbers = #tpu.dot_dimension_numbers<[1], [0], [0], [1], [0, 0, 1, 1], [], []>} : vector<8x8xf32>, vector<8x128xf32>, vector<8x128xf32> -> vector<8x128xf32>
    %235 = arith.addf %233, %234 : vector<8x128xf32>
    %cst_102 = arith.constant dense<0.000000e+00> : vector<8x128xf32>
    %236 = tpu.matmul %232, %234, %cst_102 {dimension_numbers = #tpu.dot_dimension_numbers<[1], [0], [0], [1], [0, 0, 1, 1], [], []>} : vector<8x8xf32>, vector<8x128xf32>, vector<8x128xf32> -> vector<8x128xf32>
    %237 = arith.addf %235, %236 : vector<8x128xf32>
    %cst_103 = arith.constant dense<0.000000e+00> : vector<8x128xf32>
    %238 = tpu.matmul %232, %236, %cst_103 {dimension_numbers = #tpu.dot_dimension_numbers<[1], [0], [0], [1], [0, 0, 1, 1], [], []>} : vector<8x8xf32>, vector<8x128xf32>, vector<8x128xf32> -> vector<8x128xf32>
    %239 = arith.addf %237, %238 : vector<8x128xf32>
    %cst_104 = arith.constant 0.333333343 : f32
    %240 = vector.broadcast %cst_104 : f32 to vector<8x128xf32>
    %241 = arith.mulf %239, %240 : vector<8x128xf32>
    %c0_105 = arith.constant 0 : index
    %c0_106 = arith.constant 0 : index
    %242 = vector.load %arg16[%c0_105, %c0_106] : memref<128x128xf32, #tpu.memory_space<vmem>>, vector<128x128xf32>
    %cst_107 = arith.constant dense<0.000000e+00> : vector<8x128xf32>
    %243 = tpu.matmul %241, %242, %cst_107 {dimension_numbers = #tpu.dot_dimension_numbers<[1], [0], [0], [1], [0, 0, 1, 1], [], []>} : vector<8x128xf32>, vector<128x128xf32>, vector<8x128xf32> -> vector<8x128xf32>
    %c0_108 = arith.constant 0 : index
    %c0_109 = arith.constant 0 : index
    %244 = vector.load %arg17[%c0_108, %c0_109] : memref<1x128xf32, #tpu.memory_space<vmem>>, vector<1x128xf32>
    %245 = vector.broadcast %244 : vector<1x128xf32> to vector<8x128xf32>
    %246 = arith.addf %243, %245 : vector<8x128xf32>
    %cst_110 = arith.constant 0.000000e+00 : f32
    %247 = vector.broadcast %cst_110 : f32 to vector<8x128xf32>
    %248 = arith.maximumf %246, %247 : vector<8x128xf32>
    %249 = tpu.concatenate %5, %231, %248 in 1 : vector<8x128xf32>, vector<8x128xf32>, vector<8x128xf32> -> vector<8x384xf32>
    %c0_111 = arith.constant 0 : index
    %c0_112 = arith.constant 0 : index
    %250 = vector.load %arg19[%c0_111, %c0_112] : memref<384x128xf32, #tpu.memory_space<vmem>>, vector<384x128xf32>
    %cst_113 = arith.constant dense<0.000000e+00> : vector<8x128xf32>
    %251 = tpu.matmul %249, %250, %cst_113 {dimension_numbers = #tpu.dot_dimension_numbers<[1], [0], [0], [1], [0, 0, 1, 1], [], []>} : vector<8x384xf32>, vector<384x128xf32>, vector<8x128xf32> -> vector<8x128xf32>
    %c0_114 = arith.constant 0 : index
    %c0_115 = arith.constant 0 : index
    %252 = vector.load %arg20[%c0_114, %c0_115] : memref<1x128xf32, #tpu.memory_space<vmem>>, vector<1x128xf32>
    %253 = vector.broadcast %252 : vector<1x128xf32> to vector<8x128xf32>
    %254 = arith.addf %251, %253 : vector<8x128xf32>
    %c0_116 = arith.constant 0 : index
    %c0_117 = arith.constant 0 : index
    %255 = vector.load %arg24[%c0_116, %c0_117] : memref<8x128xf32, #tpu.memory_space<vmem>>, vector<8x128xf32>
    tpu.vector_store %arg24[%c0_116, %c0_117], %254 {strides = array<i32>} : memref<8x128xf32, #tpu.memory_space<vmem>>, vector<8x128xf32>,
    %c0_118 = arith.constant 0 : index
    %c0_119 = arith.constant 0 : index
    %256 = vector.load %arg21[%c0_118, %c0_119] : memref<128x128xf32, #tpu.memory_space<vmem>>, vector<128x128xf32>
    %cst_120 = arith.constant dense<0.000000e+00> : vector<8x128xf32>
    %257 = tpu.matmul %254, %256, %cst_120 {dimension_numbers = #tpu.dot_dimension_numbers<[1], [0], [0], [1], [0, 0, 1, 1], [], []>} : vector<8x128xf32>, vector<128x128xf32>, vector<8x128xf32> -> vector<8x128xf32>
    %c0_121 = arith.constant 0 : index
    %c0_122 = arith.constant 0 : index
    %258 = vector.load %arg22[%c0_121, %c0_122] : memref<1x128xf32, #tpu.memory_space<vmem>>, vector<1x128xf32>
    %259 = vector.broadcast %258 : vector<1x128xf32> to vector<8x128xf32>
    %260 = arith.addf %257, %259 : vector<8x128xf32>
    %c0_123 = arith.constant 0 : index
    %c0_124 = arith.constant 0 : index
    %261 = vector.load %arg23[%c0_123, %c0_124] : memref<8x128xf32, #tpu.memory_space<vmem>>, vector<8x128xf32>
    tpu.vector_store %arg23[%c0_123, %c0_124], %260 {strides = array<i32>} : memref<8x128xf32, #tpu.memory_space<vmem>>, vector<8x128xf32>,
    return
  }
}

</mosaic_0001>

<bundles_post_ra>
// kernel: tpu_custom_call.1
= control target key start
LH: loop header
LB: loop body
LE: loop exit
PB: predicated region body
PF: predicated region fallthrough
CT: control target
= control target key end

     0   :  { %s3300_s0 = inlined_call_operand.vmem [shape: f32[8,7], index: 0, kind: input, shape index: {}]   ;;  %s3301_s1 = inlined_call_operand.vmem [shape: f32[10,5], index: 1, kind: input, shape index: {}]   ;;  %s3302_s2 = inlined_call_operand.vmem [shape: f32[12,6], index: 2, kind: input, shape index: {}]   ;;  %s3303_s3 = inlined_call_operand.vmem [shape: f32[7,128], index: 3, kind: input, shape index: {}]   ;;  %s3304_s4 = inlined_call_operand.vmem [shape: f32[5,128], index: 4, kind: input, shape index: {}]   ;;  %s3305_s5 = inlined_call_operand.vmem [shape: f32[6,128], index: 5, kind: input, shape index: {}]   ;;  %s3306_s6 = inlined_call_operand.hbm [shape: f32[1,128], index: 6, kind: input, shape index: {}]   ;;  %s3307_s7 = inlined_call_operand.hbm [shape: f32[1,128], index: 7, kind: input, shape index: {}]   ;;  %s3308_s8 = inlined_call_operand.hbm [shape: f32[1,128], index: 8, kind: input, shape index: {}]   ;;  %s3309_s9 = inlined_call_operand.vmem [shape: s32[3,8,1], index: 9, kind: input, shape index: {}]   ;;  %s3310_s10 = inlined_call_operand.vmem [shape: s32[4,8,1], index: 10, kind: input, shape index: {}]   ;;  %s3311_s11 = inlined_call_operand.hbm [shape: f32[1,128], index: 11, kind: input, shape index: {}]   ;;  %s3312_s12 = inlined_call_operand.hbm [shape: f32[1,128], index: 12, kind: input, shape index: {}]   ;;  %s3313_s13 = inlined_call_operand.vmem [shape: f32[128,128], index: 13, kind: input, shape index: {}]   ;;  %s3314_s14 = inlined_call_operand.vmem [shape: f32[1,128], index: 14, kind: input, shape index: {}]   ;;  %s3315_s15 = inlined_call_operand.vmem [shape: f32[1,128], index: 15, kind: input, shape index: {}]   ;;  %s3316_s16 = inlined_call_operand.hbm [shape: f32[128,128], index: 16, kind: input, shape index: {}]   ;;  %s3317_s17 = inlined_call_operand.vmem [shape: f32[1,128], index: 17, kind: input, shape index: {}]   ;;  %s3318_s18 = inlined_call_operand.vmem [shape: f32[8,8], index: 18, kind: input, shape index: {}]   ;;  %s3319_s19 = inlined_call_operand.hbm [shape: f32[384,128], index: 19, kind: input, shape index: {}]   ;;  %s3320_s20 = inlined_call_operand.vmem [shape: f32[1,128], index: 20, kind: input, shape index: {}]   ;;  %s3321_s21 = inlined_call_operand.hbm [shape: f32[128,128], index: 21, kind: input, shape index: {}]   ;;  %s3322_s22 = inlined_call_operand.vmem [shape: f32[1,128], index: 22, kind: input, shape index: {}]   ;;  %s3323_s23 = inlined_call_operand.hbm [shape: f32[8,128], index: 23, kind: output, shape index: {0}]   ;;  %s3324_s24 = inlined_call_operand.hbm [shape: f32[8,128], index: 24, kind: output, shape index: {1}]  }
   0x1   :  { %3331 = sst [smem:[#allocation26_spill]] %s3300_s0 }
   0x2   :  { %3332 = sst [smem:[#allocation27_spill]] %s3301_s1 }
   0x3   :  { %3333 = sst [smem:[#allocation28_spill]] %s3302_s2 }
   0x4   :  { %3334 = sst [smem:[#allocation29_spill]] %s3303_s3 }
   0x5   :  { %3335 = sst [smem:[#allocation30_spill]] %s3304_s4 }
   0x6   :  { %3336 = sst [smem:[#allocation31_spill]] %s3305_s5 }
   0x7   :  { %3337 = sst [smem:[#allocation32_spill]] %s3306_s6 }
   0x8   :  { %3338 = sst [smem:[#allocation33_spill]] %s3307_s7 }
   0x9   :  { %3339 = sst [smem:[#allocation34_spill]] %s3308_s8 }
   0xa   :  { %3340 = sst [smem:[#allocation35_spill]] %s3323_s23 }
   0xb   :  { %30 = vsyncpa [#allocation3], 0 }
   0xc   :  { %31 = vsyncpa [#allocation6], 0 }
   0xd   :  { %32 = vsyncpa [#allocation9], 0 }
   0xe   :  { %33 = vsyncpa [#allocation12], 0 }
   0xf   :  { %34 = vsyncpa [#allocation15], 0 }
  0x10   :  { %35 = vsyncpa [#allocation4], 0 }
  0x11   :  { %36 = vsyncpa [#allocation18], 0  ;;  %s2757_s5 = smov [#allocation5]   ;;  %s2758_s27 = smov [#allocation8]  }
  0x12   :  { %s65_s26 = sshll.u32 %s2757_s5, 4  ;;  %s89_s28 = sshll.u32 %s2758_s27, 4  ;;  %s66_s26 = int_to_ptr.vmem [resolvable:$true] %s65_s26  ;;  %s90_s28 = int_to_ptr.vmem [resolvable:$true] %s89_s28 }
  0x13   :  { %s3341_s29 = sld [smem:[#allocation33_spill]] }
  0x19   :  { %s2523_s0 = scalar_lea.hbm %s3341_s29, 16 }
  0x1a   :  { %p2524_p0 = scmp.ne.s32.totalorder %s3341_s29, %s2523_s0  ;;  %p2527_p1 = scmp.lt.u32.totalorder %s2523_s0, %s3341_s29 }
  0x1c   :  { %p2529_p2 = pnand %p2527_p1, %p2524_p0 }
  0x1e   :  { %2532 = shalt.err (!%p2529_p2)
}
  0x1f   :  { %s2533_s8 = scalar_lea.vmem %s66_s26, 16  ;;  %s2537_s4 = scalar_lea.vmem %s66_s26, 32 }
  0x20   :  { %p2534_p3 = scmp.ne.s32.totalorder %s66_s26, %s2533_s8  ;;  %p2538_p4 = scmp.lt.s32.totalorder %s66_s26, %s66_s26 }
  0x21   :  { %p2539_p5 = scmp.lt.s32.totalorder %s2537_s4, %s2533_s8 }
  0x23   :  { %p2540_p6 = por %p2539_p5, %p2538_p4 }
  0x25   :  { %p2541_p7 = pnand %p2540_p6, %p2534_p3 }
  0x27   :  { %2544 = shalt.err (!%p2541_p7)
}
  0x28   :  { %68 = dma.hbm_to_vmem [thread:$0]  %s3341_s29, 16, %s66_s26, [#allocation6]  }
  0x29   :  { %s2545_s2 = scalar_lea.hbm %s3311_s11, 16 }
  0x2a   :  { %p2546_p8 = scmp.ne.s32.totalorder %s3311_s11, %s2545_s2  ;;  %p2549_p9 = scmp.lt.u32.totalorder %s2545_s2, %s3311_s11 }
  0x2c   :  { %p2551_p10 = pnand %p2549_p9, %p2546_p8 }
  0x2e   :  { %2554 = shalt.err (!%p2551_p10)
}
  0x2f   :  { %s2555_s25 = scalar_lea.vmem %s90_s28, 16  ;;  %s2559_s8 = scalar_lea.vmem %s90_s28, 32 }
  0x30   :  { %p2556_p11 = scmp.ne.s32.totalorder %s90_s28, %s2555_s25  ;;  %p2560_p12 = scmp.lt.s32.totalorder %s90_s28, %s90_s28 }
  0x31   :  { %p2561_p13 = scmp.lt.s32.totalorder %s2559_s8, %s2555_s25 }
  0x33   :  { %p2562_p0 = por %p2561_p13, %p2560_p12 }
  0x35   :  { %p2563_p1 = pnand %p2562_p0, %p2556_p11 }
  0x37   :  { %2566 = shalt.err (!%p2563_p1)
}
  0x38   :  { %92 = dma.hbm_to_vmem [thread:$0]  %s3311_s11, 16, %s90_s28, [#allocation9]  }
  0x39   :  { %s2759_s4 = smov [#allocation11]   ;;  %s2567_s6 = scalar_lea.hbm %s3316_s16, 2048 }
  0x3a   :  { %s114_s1 = sshll.u32 %s2759_s4, 4  ;;  %p2568_p2 = scmp.ne.s32.totalorder %s3316_s16, %s2567_s6  ;;  %s115_s1 = int_to_ptr.vmem [resolvable:$true] %s114_s1 }
  0x3b   :  { %p2571_p3 = scmp.lt.u32.totalorder %s2567_s6, %s3316_s16 }
  0x3d   :  { %p2573_p4 = pnand %p2571_p3, %p2568_p2 }
  0x3f   :  { %2576 = shalt.err (!%p2573_p4)
}
  0x40   :  { %s2577_s3 = scalar_lea.vmem %s115_s1, 2048  ;;  %p2582_p6 = scmp.lt.s32.totalorder %s115_s1, %s115_s1 }
  0x41   :  { %p2578_p5 = scmp.ne.s32.totalorder %s115_s1, %s2577_s3  ;;  %p2583_p7 = scmp.lt.s32.totalorder %s2577_s3, %s2577_s3 }
  0x43   :  { %p2584_p8 = por %p2583_p7, %p2582_p6 }
  0x45   :  { %p2585_p9 = pnand %p2584_p8, %p2578_p5 }
  0x47   :  { %2588 = shalt.err (!%p2585_p9)
}
  0x48   :  { %s2760_s11 = smov 128   ;;  %s2761_s28 = smov 8  }
  0x49   :  { %120 = dma.hbm_to_vmem [thread:$0]  %s3316_s16, 2048, %s115_s1, [#allocation12], %s2760_s11, %s2760_s11, %s2761_s28  }
  0x4a   :  { %s2762_s26 = smov [#allocation2]   ;;  %s2763_s4 = smov [#allocation7]  }
  0x4b   :  { %s55_s29 = sshll.u32 %s2762_s26, 4  ;;  %s75_s5 = sshll.u32 %s2763_s4, 4  ;;  %s56_s29 = int_to_ptr.vmem [resolvable:$true] %s55_s29  ;;  %s76_s5 = int_to_ptr.vmem [resolvable:$true] %s75_s5 }
  0x4c   :  { %s3342_s2 = sld [smem:[#allocation32_spill]] }
  0x52   :  { %s2589_s7 = scalar_lea.hbm %s3342_s2, 16 }
  0x53   :  { %p2590_p10 = scmp.ne.s32.totalorder %s3342_s2, %s2589_s7  ;;  %p2593_p11 = scmp.lt.u32.totalorder %s2589_s7, %s3342_s2 }
  0x55   :  { %p2595_p12 = pnand %p2593_p11, %p2590_p10 }
  0x57   :  { %2598 = shalt.err (!%p2595_p12)
}
  0x58   :  { %s2599_s16 = scalar_lea.vmem %s56_s29, 16  ;;  %s2603_s1 = scalar_lea.vmem %s56_s29, 32 }
  0x59   :  { %p2600_p13 = scmp.ne.s32.totalorder %s56_s29, %s2599_s16  ;;  %p2604_p0 = scmp.lt.s32.totalorder %s56_s29, %s56_s29 }
  0x5a   :  { %p2605_p1 = scmp.lt.s32.totalorder %s2603_s1, %s2599_s16 }
  0x5c   :  { %p2606_p2 = por %p2605_p1, %p2604_p0 }
  0x5e   :  { %p2607_p3 = pnand %p2606_p2, %p2600_p13 }
  0x60   :  { %2610 = shalt.err (!%p2607_p3)
}
  0x61   :  { %58 = dma.hbm_to_vmem [thread:$0]  %s3342_s2, 16, %s56_s29, [#allocation3]  }
  0x62   :  { %s3343_s27 = sld [smem:[#allocation34_spill]] }
  0x68   :  { %s2611_s23 = scalar_lea.hbm %s3343_s27, 16 }
  0x69   :  { %p2612_p4 = scmp.ne.s32.totalorder %s3343_s27, %s2611_s23  ;;  %p2615_p5 = scmp.lt.u32.totalorder %s2611_s23, %s3343_s27 }
  0x6b   :  { %p2617_p6 = pnand %p2615_p5, %p2612_p4 }
  0x6d   :  { %2620 = shalt.err (!%p2617_p6)
}
  0x6e   :  { %s2621_s3 = scalar_lea.vmem %s76_s5, 16  ;;  %s2625_s16 = scalar_lea.vmem %s76_s5, 32 }
  0x6f   :  { %p2622_p7 = scmp.ne.s32.totalorder %s76_s5, %s2621_s3  ;;  %p2626_p8 = scmp.lt.s32.totalorder %s76_s5, %s76_s5 }
  0x70   :  { %p2627_p9 = scmp.lt.s32.totalorder %s2625_s16, %s2621_s3 }
  0x72   :  { %p2628_p10 = por %p2627_p9, %p2626_p8 }
  0x74   :  { %p2629_p11 = pnand %p2628_p10, %p2622_p7 }
  0x76   :  { %2632 = shalt.err (!%p2629_p11)
}
  0x77   :  { %78 = dma.hbm_to_vmem [thread:$0]  %s3343_s27, 16, %s76_s5, [#allocation6]  }
  0x78   :  { %s2764_s1 = smov [#allocation10]   ;;  %s2765_s8 = smov [#allocation13]  }
  0x79   :  { %s99_s25 = sshll.u32 %s2764_s1, 4  ;;  %s130_s26 = sshll.u32 %s2765_s8, 4  ;;  %s100_s25 = int_to_ptr.vmem [resolvable:$true] %s99_s25  ;;  %s131_s26 = int_to_ptr.vmem [resolvable:$true] %s130_s26 }
  0x7a   :  { %s2633_s6 = scalar_lea.hbm %s3312_s12, 16 }
  0x7b   :  { %p2634_p12 = scmp.ne.s32.totalorder %s3312_s12, %s2633_s6  ;;  %p2637_p13 = scmp.lt.u32.totalorder %s2633_s6, %s3312_s12 }
  0x7d   :  { %p2639_p0 = pnand %p2637_p13, %p2634_p12 }
  0x7f   :  { %2642 = shalt.err (!%p2639_p0)
}
  0x80   :  { %s2643_s5 = scalar_lea.vmem %s100_s25, 16  ;;  %s2647_s27 = scalar_lea.vmem %s100_s25, 32 }
  0x81   :  { %p2644_p1 = scmp.ne.s32.totalorder %s100_s25, %s2643_s5  ;;  %p2648_p2 = scmp.lt.s32.totalorder %s100_s25, %s100_s25 }
  0x82   :  { %p2649_p3 = scmp.lt.s32.totalorder %s2647_s27, %s2643_s5 }
  0x84   :  { %p2650_p4 = por %p2649_p3, %p2648_p2 }
  0x86   :  { %p2651_p5 = pnand %p2650_p4, %p2644_p1 }
  0x88   :  { %2654 = shalt.err (!%p2651_p5)
}
  0x89   :  { %102 = dma.hbm_to_vmem [thread:$0]  %s3312_s12, 16, %s100_s25, [#allocation9]  }
  0x8a   :  { %s2655_s8 = scalar_lea.hbm %s3319_s19, 6144 }
  0x8b   :  { %p2656_p6 = scmp.ne.s32.totalorder %s3319_s19, %s2655_s8  ;;  %p2659_p7 = scmp.lt.u32.totalorder %s2655_s8, %s3319_s19 }
  0x8d   :  { %p2661_p8 = pnand %p2659_p7, %p2656_p6 }
  0x8f   :  { %2664 = shalt.err (!%p2661_p8)
}
  0x90   :  { %s2665_s0 = scalar_lea.vmem %s131_s26, 6144  ;;  %p2670_p10 = scmp.lt.s32.totalorder %s131_s26, %s131_s26 }
  0x91   :  { %p2666_p9 = scmp.ne.s32.totalorder %s131_s26, %s2665_s0  ;;  %p2671_p11 = scmp.lt.s32.totalorder %s2665_s0, %s2665_s0 }
  0x93   :  { %p2672_p12 = por %p2671_p11, %p2670_p10 }
  0x95   :  { %p2673_p13 = pnand %p2672_p12, %p2666_p9 }
  0x97   :  { %2676 = shalt.err (!%p2673_p13)
}
  0x98   :  { %136 = dma.hbm_to_vmem [thread:$0]  %s3319_s19, 6144, %s131_s26, [#allocation12], %s2760_s11, %s2760_s11, %s2761_s28  }
  0x99   :  { %s2766_s30 = smov [#allocation14]   ;;  %s2677_s16 = scalar_lea.hbm %s3321_s21, 2048 }
  0x9a   :  { %s144_s3 = sshll.u32 %s2766_s30, 4  ;;  %p2678_p0 = scmp.ne.s32.totalorder %s3321_s21, %s2677_s16  ;;  %s145_s3 = int_to_ptr.vmem [resolvable:$true] %s144_s3 }
  0x9b   :  { %p2681_p1 = scmp.lt.u32.totalorder %s2677_s16, %s3321_s21 }
  0x9d   :  { %p2683_p2 = pnand %p2681_p1, %p2678_p0 }
  0x9f   :  { %2686 = shalt.err (!%p2683_p2)
}
  0xa0   :  { %s2687_s4 = scalar_lea.vmem %s145_s3, 2048  ;;  %p2692_p4 = scmp.lt.s32.totalorder %s145_s3, %s145_s3 }
  0xa1   :  { %p2688_p3 = scmp.ne.s32.totalorder %s145_s3, %s2687_s4  ;;  %p2693_p5 = scmp.lt.s32.totalorder %s2687_s4, %s2687_s4 }
  0xa3   :  { %p2694_p6 = por %p2693_p5, %p2692_p4 }
  0xa5   :  { %p2695_p7 = pnand %p2694_p6, %p2688_p3 }
  0xa7   :  { %2698 = shalt.err (!%p2695_p7)
}
  0xa8   :  { %150 = dma.hbm_to_vmem [thread:$0]  %s3321_s21, 2048, %s145_s3, [#allocation15], %s2760_s11, %s2760_s11, %s2761_s28  }
  0xa9   :  { %2743 = dma.done.wait [#allocation3], 16  }
  0xaa   :  { %2744 = vsyncadd [#allocation3], 4294967280 }
  0xab   :  { %2745 = dma.done.wait [#allocation6], 32  }
  0xac   :  { %2746 = vsyncadd [#allocation6], 4294967264 }
  0xad   :  { %2747 = dma.done.wait [#allocation9], 32  }
  0xae   :  { %2748 = vsyncadd [#allocation9], 4294967264 }
  0xaf   :  { %2749 = dma.done.wait [#allocation12], 8192  }
  0xb0   :  { %2750 = vsyncadd [#allocation12], 4294959104 }
  0xb1   :  { %2751 = dma.done.wait [#allocation15], 2048  }
  0xb2   :  { %2752 = vsyncadd [#allocation15], 4294965248  ;;  %v2767_v0 = vmov 0.0   ;;  %vm2768_vm0 = vmmov 0   ;;  %v2769_v1 = vmov 0   ;;  %vm190_vm1 = vcmask 1046528  }
  0xb3   :  { %2093 = vmatprep.subr.mxu1 %v2767_v0  ;;  %2095 = vmatprep.mubr.msk.f32.mxu1 %vm2768_vm0, %v2767_v0  ;;  %vm377_vm2 = vcmask 1045504   ;;  %vm186_vm3 = vcmask 56320   ;;  %vm370_vm4 = vcmask 48128   ;;  %s3344_s28 = sld [smem:[#allocation29_spill]]  ;;  %s3345_s7 = sld [smem:[#allocation31_spill]]  ;;  %vm281_vm5 = vcmask 1044480  }
  0xb4   :  { %2493 = vset.pattern.permute.xlu0 %v2769_v1  ;;  %2494 = vset.pattern.permute.xlu1 %v2769_v1  ;;  %s3346_s25 = sld [smem:[#allocation26_spill]]  ;;  %s3347_s5 = sld [smem:[#allocation28_spill]]  ;;  %vm274_vm6 = vcmask 39936   ;;  %v459_v9 = vld [vmem:[%s3309_s9] sm:$0xff]  ;;  %v1931_v11 = vld [vmem:[%s3309_s9 + $0x10] sm:$0xff]  ;;  %v1928_v12 = vld [vmem:[%s3309_s9 + $0x8] sm:$0xff]  ;;  %v457_v22 = vlaneseq }
  0xb5   :  { %s3348_s1 = sld [smem:[#allocation30_spill]]  ;;  %s3349_s19 = sld [smem:[#allocation27_spill]]  ;;  %461 = vperm.xlu0 %2493, %v459_v9   ;;  %644 = vperm.xlu1 %2494, %v1931_v11   ;;  %v1937_v13 = vld [vmem:[%s3310_s10 + $0x8] sm:$0xff]  ;;  %v1943_v14 = vld [vmem:[%s3310_s10 + $0x18] sm:$0xff]  ;;  %v751_v15 = vld [vmem:[%s3310_s10] sm:$0xff]  ;;  %v2770_v17 = vmov 0.0|0.0  }
  0xb6   :  { %v1940_v16 = vld [vmem:[%s3310_s10 + $0x10] sm:$0xff]  ;;  %v1921_v24 = vld [vmem:[#allocation7] ss:$0 sm:$0xff]  ;;  %v458_v26 = vand.u32 127, %v457_v22  ;;  %v1917_v29 = vld [vmem:[#allocation5] ss:$0 sm:$0xff] }
  0xb7   :  { %vm761_vm7 = vcmask 1043456   ;;  %vm469_vm8 = vcmask 1041408   ;;  %vm2771_vm10 = vmmov 1   ;;  %vm757_vm14 = vcmask 97280   ;;  %v1914_v49 = vld [vmem:[#allocation2] ss:$0 sm:$0xff] }
  0xb8   :  { %vm3066_vm11 = vmpackc.low %vm761_vm7, %vm2771_vm10  ;;  %v3128_v52 = vld [vmem:[%s3318_s18] sm:$0xff]  ;;  %v1936_v54 = vld [vmem:[#allocation10] ss:$0 sm:$0xff] }
  0xb9   :  { %v178_v2 = vld [vmem:[%s3344_s28] sm:$0x7f]  ;;  %558 = vperm.xlu0 %2493, %v1928_v12   ;;  %850 = vperm.xlu1 %2494, %v1937_v13   ;;  %vm3070_vm13 = vmpackc.low %vm469_vm8, %vm2771_vm10  ;;  %v1150_v37 = vld [vmem:[%s3313_s13 + $0x70] sm:$0xff] }
  0xba   :  { %v362_v3 = vld [vmem:[%s3345_s7] sm:$0x3f]  ;;  %2094 = vmatpush3.msk.msra.mxu1 %vm190_vm1, %v178_v2  ;;  %v361_v6 = vld [vmem:[%s3347_s5 + $0x8] sm:$0xf]  ;;  %vm465_vm1 = vcmask 80896   ;;  %s2772_s7 = smov [#allocation17]  }
  0xbb   :  { %v177_v4 = vld [vmem:[%s3346_s25] sm:$0xff]  ;;  %2103 = vmatprep.subr.msk.mxu0 %vm377_vm2, %v362_v3  ;;  %v265_v10 = vld [vmem:[%s3349_s19 + $0x8] sm:$0x3]  ;;  %s1897_s0 = sshll.u32 %s2772_s7, 4  ;;  %s1898_s0 = int_to_ptr.vmem [resolvable:$true] %s1897_s0 }
  0xbc   :  { %v360_v5 = vld [vmem:[%s3347_s5] sm:$0xff]  ;;  %2096 = vmatmul.mubr.msk.f32.vlgmr.msra.gmra.mrb[0].mxu1 %vm186_vm3, %v177_v4  ;;  %2104 = vmatpush3.msk.msra.mxu0 %vm377_vm2, %v362_v3  ;;  %s2699_s12 = scalar_lea.vmem %s1898_s0, 128  ;;  %p2704_p9 = scmp.lt.s32.totalorder %s1898_s0, %s1898_s0 }
  0xbd   :  { %v266_v7 = vld [vmem:[%s3348_s1] sm:$0x1f]  ;;  %2105 = vmatprep.mubr.msk.f32.mxu0 %vm370_vm4, %v360_v5  ;;  %1022 = vperm.xlu0 %2493, %v1943_v14   ;;  %p2700_p8 = scmp.ne.s32.totalorder %s1898_s0, %s2699_s12  ;;  %p2705_p10 = scmp.lt.s32.totalorder %s2699_s12, %s2699_s12 }
  0xbe   :  { %v264_v8 = vld [vmem:[%s3349_s19] sm:$0xff]  ;;  %2098 = vmatprep.subr.msk.mxu1 %vm281_vm5, %v266_v7  ;;  %2106 = vmatmul.mubr.msk.f32.vlgmr.msra.gmra.mrb[0].mxu0 %vm370_vm4, %v361_v6 }
  0xbf   :  { %2099 = vmatpush3.msk.msra.mxu1 %vm281_vm5, %v266_v7  ;;  %2100 = vmatprep.mubr.msk.f32.mxu1 %vm274_vm6, %v264_v8  ;;  %v1927_v6 = vld [vmem:[#allocation8] ss:$0 sm:$0xff]  ;;  %p2706_p11 = por %p2705_p10, %p2704_p9 }
  0xc0   :  { %2101 = vmatmul.mubr.msk.f32.vlgmr.msra.gmra.mrb[2].mxu1 %vm274_vm6, %v265_v10  ;;  %2133 = vmatprep.mubr.msk.f32.mxu0 %vm2768_vm0, %v2767_v0  ;;  %vm1279_vm6 = vcmask 64512   ;;  %v1140_v22 = vld [vmem:[%s3313_s13 + $0x20] sm:$0xff] }
  0xc1   :  { %2112 = vmatprep.mubr.msk.f32.mxu1 %vm2768_vm0, %v2767_v0  ;;  %753 = vperm.xlu1 %2494, %v751_v15   ;;  %v1136_v15 = vld [vmem:[%s3313_s13] sm:$0xff]  ;;  %p2707_p12 = pnand %p2706_p11, %p2700_p8 }
  0xc2   :  { %936 = vperm.xlu0 %2493, %v1940_v16   ;;  %2324 = vmatprep.subr.bf16.mxu0 %v2770_v17  ;;  %v1137_v16 = vld [vmem:[%s3313_s13 + $0x8] sm:$0xff] }
  0xc3   :  { %2312 = vmatprep.subr.bf16.mxu1 %v2770_v17 }
 0x134   :  { %v462_v18 = vpop.permute.xlu0 %461  ;;  %v645_v19 = vpop.permute.xlu1 %644 }
 0x135   :  { %vm463_vm12 = vcmp.eq.s32.totalorder %v462_v18, %v458_v26  ;;  %vm646_vm3 = vcmp.eq.s32.totalorder %v645_v19, %v458_v26  ;;  %v2340_v18 = vpack.c.bf16 %v1137_v16, %v1136_v15  ;;  %v1138_v19 = vld [vmem:[%s3313_s13 + $0x10] sm:$0xff] }
 0x136   :  { %v464_v44 = vsel %vm463_vm12, 1.0, %v2767_v0  ;;  %v647_v47 = vsel %vm646_vm3, 1.0, %v2767_v0 }
 0x138   :  { %v559_v20 = vpop.permute.xlu0 %558  ;;  %v851_v21 = vpop.permute.xlu1 %850 }
 0x139   :  { %vm560_vm2 = vcmp.eq.s32.totalorder %v559_v20, %v458_v26  ;;  %vm852_vm4 = vcmp.eq.s32.totalorder %v851_v21, %v458_v26  ;;  %v1139_v20 = vld [vmem:[%s3313_s13 + $0x18] sm:$0xff] }
 0x13a   :  { %v561_v46 = vsel %vm560_vm2, 1.0, %v2767_v0  ;;  %v853_v48 = vsel %vm852_vm4, 1.0, %v2767_v0  ;;  %v2344_v21 = vpack.c.bf16 %v1139_v20, %v1138_v19 }
 0x13c   :  { %v3064_v25 = vpop.permute.xlu0 %1022 }
 0x13d   :  { %vm1024_vm5 = vcmp.eq.s32.totalorder %v3064_v25, %v458_v26  ;;  %v1142_v25 = vld [vmem:[%s3313_s13 + $0x30] sm:$0xff] }
 0x13e   :  { %v1025_v51 = vsel %vm1024_vm5, 1.0, %v2767_v0 }
 0x140   :  { %v754_v30 = vpop.permute.xlu1 %753 }
 0x141   :  { %vm755_vm9 = vcmp.eq.s32.totalorder %v754_v30, %v458_v26  ;;  %v937_v40 = vpop.permute.xlu0 %936 }
 0x142   :  { %v756_v43 = vsel %vm755_vm9, 1.0, %v2767_v0  ;;  %vm938_vm15 = vcmp.eq.s32.totalorder %v937_v40, %v458_v26  ;;  %v1143_v26 = vld [vmem:[%s3313_s13 + $0x38] sm:$0xff] }
 0x143   :  { %v939_v45 = vsel %vm938_vm15, 1.0, %v2767_v0 }
 0x18f   :  { %v3062_v23 = vpop.f32.mrb[0].mxu1 }
 0x190   :  { %v2097_v27 = vpop.f32.mrb[1].mxu1  ;;  %v3118_v50 = vadd.f32 %v1914_v49, %v3062_v23  ;;  %v1141_v23 = vld [vmem:[%s3313_s13 + $0x28] sm:$0xff] }
 0x191   :  { %v2107_v28 = vpop.f32.mrb[0].mxu0  ;;  %v2352_v27 = vpack.c.bf16 %v1143_v26, %v1142_v25 }
 0x192   :  { %v453_v31 = vadd.f32 %v2107_v28, %v1921_v24  ;;  %v447_v32 = vpop.f32.mrb[1].mxu0  ;;  %v1144_v28 = vld [vmem:[%s3313_s13 + $0x40] sm:$0xff] }
 0x193   :  { %v448_v33 = vadd.f32 %v1921_v24, %v447_v32  ;;  %v2102_v34 = vpop.f32.mrb[2].mxu1  ;;  %v2348_v24 = vpack.c.bf16 %v1141_v23, %v1140_v22  ;;  %v1147_v32 = vld [vmem:[%s3313_s13 + $0x58] sm:$0xff] }
 0x194   :  { %v357_v35 = vadd.f32 %v2102_v34, %v1917_v29  ;;  %v351_v36 = vpop.f32.mrb[3].mxu1  ;;  %v1148_v34 = vld [vmem:[%s3313_s13 + $0x60] sm:$0xff] }
 0x195   :  { %v2325_v38 = vpack.c.bf16 %v453_v31, %v448_v33  ;;  %v352_v39 = vadd.f32 %v1917_v29, %v351_v36  ;;  %v1145_v29 = vld [vmem:[%s3313_s13 + $0x48] sm:$0xff]  ;;  %v1146_v31 = vld [vmem:[%s3313_s13 + $0x50] sm:$0xff] }
 0x196   :  { %v2356_v30 = vpack.c.bf16 %v1145_v29, %v1144_v28  ;;  %v2360_v33 = vpack.c.bf16 %v1147_v32, %v1146_v31 }
 0x197   :  { %v2313_v42 = vpack.c.bf16 %v357_v35, %v352_v39  ;;  %2327 = vmatpush3.bf16.msk.msra.mxu0 %vm3066_vm11, %v2325_v38  ;;  %v1149_v35 = vld [vmem:[%s3313_s13 + $0x68] sm:$0xff] }
 0x198   :  { %2332 = vmatprep.subr.bf16.mxu0 %v2770_v17  ;;  %v2364_v36 = vpack.c.bf16 %v1149_v35, %v1148_v34 }
 0x199   :  { %2315 = vmatpush3.bf16.msk.msra.mxu1 %vm3070_vm13, %v2313_v42 }
 0x19a   :  { %2134 = vmatmul.mubr.msk.f32.vlgmr.msra.gmra.mrb[2].mxu0 %vm757_vm14, %v756_v43  ;;  %2316 = vmatprep.subr.bf16.mxu1 %v2770_v17 }
 0x19b   :  { %2335 = vmatpush3.bf16.msk.msra.mxu0 %vm3066_vm11, %v2325_v38  ;;  %2147 = vmatprep.mubr.msk.f32.mxu0 %vm2768_vm0, %v2767_v0 }
 0x19c   :  { %2113 = vmatmul.mubr.msk.f32.vlgmr.msra.gmra.mrb[4].mxu1 %vm465_vm1, %v464_v44  ;;  %2341 = vmatprep.subr.bf16.mxu0 %v2340_v18 }
 0x19d   :  { %2319 = vmatpush3.bf16.msk.msra.mxu1 %vm3070_vm13, %v2313_v42  ;;  %2119 = vmatprep.mubr.msk.f32.mxu1 %vm2768_vm0, %v2767_v0 }
 0x19e   :  { %2148 = vmatmul.mubr.msk.f32.vlgmr.msra.gmra.mrb[4].mxu0 %vm757_vm14, %v939_v45  ;;  %2320 = vmatprep.subr.bf16.mxu1 %v2770_v17 }
 0x19f   :  { %2343 = vmatpush3.bf16.msra.mxu0 %v2340_v18 }
 0x1a0   :  { %2120 = vmatmul.mubr.msk.f32.vlgmr.msra.gmra.mrb[6].mxu1 %vm465_vm1, %v561_v46  ;;  %2345 = vmatprep.subr.bf16.mxu0 %v2344_v21 }
 0x1a1   :  { %2323 = vmatpush3.bf16.msk.msra.mxu1 %vm3070_vm13, %v2313_v42  ;;  %2126 = vmatprep.mubr.msk.f32.mxu1 %vm2768_vm0, %v2767_v0 }
 0x1a2   :  { %2328 = vmatprep.subr.bf16.mxu1 %v2770_v17 }
 0x1a3   :  { %2347 = vmatpush3.bf16.msra.mxu0 %v2344_v21 }
 0x1a4   :  { %2127 = vmatmul.mubr.msk.f32.vlgmr.msra.gmra.mrb[8].mxu1 %vm465_vm1, %v647_v47  ;;  %2349 = vmatprep.subr.bf16.mxu0 %v2348_v24 }
 0x1a5   :  { %2331 = vmatpush3.bf16.msk.msra.mxu1 %vm3066_vm11, %v2325_v38  ;;  %2140 = vmatprep.mubr.msk.f32.mxu1 %vm2768_vm0, %v2767_v0 }
 0x1a6   :  { %2336 = vmatprep.subr.bf16.mxu1 %v2770_v17 }
 0x1a7   :  { %2351 = vmatpush3.bf16.msra.mxu0 %v2348_v24 }
 0x1a8   :  { %2141 = vmatmul.mubr.msk.f32.vlgmr.msra.gmra.mrb[10].mxu1 %vm757_vm14, %v853_v48  ;;  %2353 = vmatprep.subr.bf16.mxu0 %v2352_v27 }
 0x1a9   :  { %2339 = vmatpush3.bf16.msk.msra.mxu1 %vm3066_vm11, %v2325_v38  ;;  %2154 = vmatprep.mubr.msk.f32.mxu1 %vm2768_vm0, %v2767_v0  ;;  %v1151_v38 = vld [vmem:[%s3313_s13 + $0x78] sm:$0xff] }
 0x1aa   :  { %2192 = vmatprep.subr.mxu1 %v2767_v0  ;;  %v2368_v39 = vpack.c.bf16 %v1151_v38, %v1150_v37 }
 0x1ab   :  { %2355 = vmatpush3.bf16.msra.mxu0 %v2352_v27 }
 0x1ac   :  { %2155 = vmatmul.mubr.msk.f32.vlgmr.msra.gmra.mrb[12].mxu1 %vm757_vm14, %v1025_v51  ;;  %2357 = vmatprep.subr.bf16.mxu0 %v2356_v30 }
 0x1ad   :  { %2193 = vmatpush3.msra.mxu1 %v3118_v50  ;;  %2194 = vmatprep.mubr.msk.f32.mxu1 %vm2768_vm0, %v2767_v0 }
 0x1ae   :  { %2197 = vmatprep.subr.mxu1 %v2767_v0 }
 0x1af   :  { %2359 = vmatpush3.bf16.msra.mxu0 %v2356_v30 }
 0x1b0   :  { %2195 = vmatmul.mubr.msk.f32.vlgmr.msra.gmra.mrb[14].mxu1 %vm1279_vm6, %v3128_v52  ;;  %2361 = vmatprep.subr.bf16.mxu0 %v2360_v33 }
 0x1b1   :  { %2199 = vmatprep.mubr.msk.f32.mxu1 %vm2768_vm0, %v2767_v0 }
 0x1b3   :  { %2363 = vmatpush3.bf16.msra.mxu0 %v2360_v33 }
 0x1b4   :  { %2365 = vmatprep.subr.bf16.mxu0 %v2364_v36 }
 0x1b7   :  { %2367 = vmatpush3.bf16.msra.mxu0 %v2364_v36 }
 0x1b8   :  { %2369 = vmatprep.subr.bf16.mxu0 %v2368_v39 }
 0x1bb   :  { %2371 = vmatpush3.bf16.msra.mxu0 %v2368_v39 }
 0x26d   :  { %v3135_v53 = vpop.f32.mrb[2].mxu0 }
 0x26e   :  { %v2135_v55 = vpop.f32.mrb[3].mxu0  ;;  %v841_v56 = vmul.f32 %v1936_v54, %v3135_v53 }
 0x26f   :  { %v3138_v57 = vpop.f32.mrb[4].mxu1 }
 0x270   :  { %v2114_v58 = vpop.f32.mrb[5].mxu1  ;;  %842 = vadd.xlane.f32.xlu1 %v841_v56  ;;  %v549_v9 = vmul.f32 %v1927_v6, %v3138_v57 }
 0x271   :  { %v3140_v59 = vpop.f32.mrb[4].mxu0 }
 0x272   :  { %v2149_v60 = vpop.f32.mrb[5].mxu0  ;;  %v1013_v61 = vmul.f32 %v1936_v54, %v3140_v59 }
 0x273   :  { %v3143_v62 = vpop.f32.mrb[6].mxu1 }
 0x274   :  { %1014 = vadd.xlane.f32.xlu0 %v1013_v61  ;;  %v2121_v63 = vpop.f32.mrb[7].mxu1  ;;  %v635_v14 = vmul.f32 %v1927_v6, %v3143_v62 }
 0x277   :  { %v3145_v1 = vpop.f32.mrb[8].mxu1 }
 0x278   :  { %v2128_v2 = vpop.f32.mrb[9].mxu1  ;;  %v721_v13 = vmul.f32 %v1927_v6, %v3145_v1 }
 0x27b   :  { %v3147_v3 = vpop.f32.mrb[10].mxu1 }
 0x27c   :  { %v2142_v4 = vpop.f32.mrb[11].mxu1  ;;  %v927_v5 = vmul.f32 %v1936_v54, %v3147_v3 }
 0x27e   :  { %928 = vadd.xlane.f32.xlu0 %v927_v5 }
 0x27f   :  { %v3150_v7 = vpop.f32.mrb[12].mxu1 }
 0x280   :  { %v2156_v8 = vpop.f32.mrb[13].mxu1  ;;  %v1099_v10 = vmul.f32 %v1936_v54, %v3150_v7 }
 0x282   :  { %550 = vadd.xlane.f32.xlu0 %v549_v9  ;;  %1100 = vadd.xlane.f32.xlu1 %v1099_v10 }
 0x283   :  { %v3154_v11 = vpop.f32.mrb[14].mxu1 }
 0x284   :  { %v2196_v12 = vpop.f32.mrb[15].mxu1  ;;  %2198 = vmatpush3.msra.mxu1 %v3154_v11 }
 0x285   :  { %2200 = vmatmul.mubr.msk.f32.vlgmr.msra.gmra.mrb[16].mxu1 %vm1279_vm6, %v3128_v52  ;;  %2202 = vmatprep.subr.mxu1 %v2767_v0 }
 0x286   :  { %722 = vadd.xlane.f32.xlu0 %v721_v13  ;;  %636 = vadd.xlane.f32.xlu1 %v635_v14 }
 0x287   :  { %2204 = vmatprep.mubr.msk.f32.mxu1 %vm2768_vm0, %v2767_v0 }
 0x2fd   :  { %v843_v41 = vpop.xlane.xlu1 %842 }
 0x2fe   :  { %v845_v42 = vmul.f32 0.2, %v843_v41  ;;  %vm844_vm7 = vcmp.gt.f32.partialorder %v843_v41, 0.0 }
 0x300   :  { %v846_v46 = vsel %vm844_vm7, %v843_v41, %v845_v42 }
 0x301   :  { %v1015_v40 = vpop.xlane.xlu0 %1014 }
 0x302   :  { %v1017_v44 = vmul.f32 0.2, %v1015_v40  ;;  %vm1016_vm9 = vcmp.gt.f32.partialorder %v1015_v40, 0.0 }
 0x304   :  { %v1018_v54 = vsel %vm1016_vm9, %v1015_v40, %v1017_v44 }
 0x30b   :  { %v929_v43 = vpop.xlane.xlu0 %928 }
 0x30c   :  { %vm930_vm8 = vcmp.gt.f32.partialorder %v929_v43, 0.0  ;;  %v931_v45 = vmul.f32 0.2, %v929_v43 }
 0x30e   :  { %v932_v47 = vsel %vm930_vm8, %v929_v43, %v931_v45 }
 0x30f   :  { %v1105_v48 = vmax.f32 %v846_v46, %v932_v47  ;;  %v551_v49 = vpop.xlane.xlu0 %550  ;;  %v1101_v51 = vpop.xlane.xlu1 %1100 }
 0x310   :  { %vm1102_vm10 = vcmp.gt.f32.partialorder %v1101_v51, 0.0  ;;  %v1103_v55 = vmul.f32 0.2, %v1101_v51  ;;  %v553_v58 = vmul.f32 0.2, %v551_v49  ;;  %vm552_vm11 = vcmp.gt.f32.partialorder %v551_v49, 0.0 }
 0x311   :  { %v1106_v56 = vmax.f32 %v1105_v48, %v1018_v54 }
 0x312   :  { %v1104_v60 = vsel %vm1102_vm10, %v1101_v51, %v1103_v55  ;;  %v554_v10 = vsel %vm552_vm11, %v551_v49, %v553_v58 }
 0x313   :  { %v1107_v61 = vmax.f32 %v1106_v56, %v1104_v60  ;;  %v723_v63 = vpop.xlane.xlu0 %722  ;;  %v637_v2 = vpop.xlane.xlu1 %636 }
 0x314   :  { %v725_v4 = vmul.f32 0.2, %v723_v63  ;;  %vm638_vm12 = vcmp.gt.f32.partialorder %v637_v2, 0.0  ;;  %v639_v5 = vmul.f32 0.2, %v637_v2  ;;  %vm724_vm13 = vcmp.gt.f32.partialorder %v723_v63, 0.0 }
 0x315   :  { %v1108_v6 = vsub.f32 %v846_v46, %v1107_v61  ;;  %v1111_v8 = vsub.f32 %v932_v47, %v1107_v61  ;;  %v1114_v9 = vsub.f32 %v1018_v54, %v1107_v61  ;;  %v1117_v12 = vsub.f32 %v1104_v60, %v1107_v61 }
 0x316   :  { %v640_v13 = vsel %vm638_vm12, %v637_v2, %v639_v5  ;;  %v726_v19 = vsel %vm724_vm13, %v723_v63, %v725_v4  ;;  %v1498_v4 = vld [vmem:[#allocation11 + $0x8] sm:$0xff] }
 0x317   :  { %v1109_v14 = vmul.f32 1.442695, %v1108_v6  ;;  %v1112_v15 = vmul.f32 1.442695, %v1111_v8  ;;  %v727_v16 = vmax.f32 %v554_v10, %v640_v13  ;;  %v1115_v18 = vmul.f32 1.442695, %v1114_v9 }
 0x318   :  { %v1118_v21 = vmul.f32 1.442695, %v1117_v12  ;;  %v1501_v9 = vld [vmem:[#allocation11 + $0x20] sm:$0xff]  ;;  %v1503_v12 = vld [vmem:[#allocation11 + $0x30] sm:$0xff] }
 0x319   :  { %2495 = vpow2.f32 %v1109_v14  ;;  %v728_v20 = vmax.f32 %v727_v16, %v726_v19  ;;  %v1505_v14 = vld [vmem:[#allocation11 + $0x40] sm:$0xff] }
 0x31a   :  { %2497 = vpow2.f32 %v1112_v15  ;;  %v1506_v15 = vld [vmem:[#allocation11 + $0x48] sm:$0xff] }
 0x31b   :  { %v729_v22 = vsub.f32 %v554_v10, %v728_v20  ;;  %v732_v23 = vsub.f32 %v640_v13, %v728_v20  ;;  %v735_v24 = vsub.f32 %v726_v19, %v728_v20  ;;  %2499 = vpow2.f32 %v1115_v18  ;;  %v1502_v10 = vld [vmem:[#allocation11 + $0x28] sm:$0xff]  ;;  %v1504_v13 = vld [vmem:[#allocation11 + $0x38] sm:$0xff]  ;;  %v1507_v18 = vld [vmem:[#allocation11 + $0x50] sm:$0xff] }
 0x31c   :  { %2501 = vpow2.f32 %v1118_v21  ;;  %v2385_v16 = vpack.c.bf16 %v1506_v15, %v1505_v14  ;;  %v1508_v19 = vld [vmem:[#allocation11 + $0x58] sm:$0xff]  ;;  %v1509_v20 = vld [vmem:[#allocation11 + $0x60] sm:$0xff]  ;;  %v1601_v14 = vld [vmem:[#allocation13 + $0x50] sm:$0xff] }
 0x31d   :  { %v730_v25 = vmul.f32 1.442695, %v729_v22  ;;  %v733_v26 = vmul.f32 1.442695, %v732_v23  ;;  %v736_v27 = vmul.f32 1.442695, %v735_v24  ;;  %v2388_v21 = vpack.c.bf16 %v1508_v19, %v1507_v18 }
 0x31e   :  { %v1510_v22 = vld [vmem:[#allocation11 + $0x68] sm:$0xff]  ;;  %v1511_v24 = vld [vmem:[#allocation11 + $0x70] sm:$0xff]  ;;  %v1602_v15 = vld [vmem:[#allocation13 + $0x58] sm:$0xff] }
 0x31f   :  { %2503 = vpow2.f32 %v730_v25  ;;  %v2391_v23 = vpack.c.bf16 %v1510_v22, %v1509_v20  ;;  %v1512_v25 = vld [vmem:[#allocation11 + $0x78] sm:$0xff]  ;;  %v1620_v18 = vld [vmem:[#allocation13 + $0xe8] sm:$0xff]  ;;  %v2418_v19 = vpack.c.bf16 %v1602_v15, %v1601_v14 }
 0x320   :  { %2505 = vpow2.f32 %v733_v26  ;;  %v2394_v26 = vpack.c.bf16 %v1512_v25, %v1511_v24  ;;  %v1604_v22 = vld [vmem:[#allocation13 + $0x68] sm:$0xff]  ;;  %v1622_v24 = vld [vmem:[#allocation13 + $0xf8] sm:$0xff] }
 0x321   :  { %2507 = vpow2.f32 %v736_v27  ;;  %v1946_v27 = vld [vmem:[%s3314_s14] ss:$0 sm:$0xff] }
 0x323   :  { %v2496_v28 = vpop.eup %2495 }
 0x324   :  { %v2498_v29 = vpop.eup %2497 }
 0x325   :  { %v1120_v30 = vadd.f32 %v2498_v29, %v2496_v28  ;;  %v2500_v31 = vpop.eup %2499 }
 0x326   :  { %v2502_v33 = vpop.eup %2501 }
 0x327   :  { %v1121_v32 = vadd.f32 %v2500_v31, %v1120_v30 }
 0x329   :  { %v2504_v34 = vpop.eup %2503  ;;  %v1122_v35 = vadd.f32 %v2502_v33, %v1121_v32  ;;  %v1947_v32 = vld [vmem:[%s3315_s15] ss:$0 sm:$0xff] }
 0x32a   :  { %v2506_v36 = vpop.eup %2505 }
 0x32b   :  { %2509 = vrcp.f32 %v1122_v35  ;;  %v738_v37 = vadd.f32 %v2506_v36, %v2504_v34  ;;  %v2508_v38 = vpop.eup %2507 }
 0x32d   :  { %v739_v39 = vadd.f32 %v2508_v38, %v738_v37 }
 0x32f   :  { %2511 = vrcp.f32 %v739_v39 }
 0x335   :  { %v2510_v40 = vpop.eup %2509 }
 0x336   :  { %v1125_v41 = vmul.f32 %v2510_v40, %v2496_v28  ;;  %v1127_v42 = vmul.f32 %v2510_v40, %v2498_v29  ;;  %v1130_v43 = vmul.f32 %v2510_v40, %v2500_v31  ;;  %v1133_v46 = vmul.f32 %v2510_v40, %v2502_v33 }
 0x338   :  { %v1126_v44 = vmul.f32 %v1125_v41, %v3135_v53  ;;  %v1128_v45 = vmul.f32 %v1127_v42, %v3147_v3  ;;  %v1131_v48 = vmul.f32 %v1130_v43, %v3140_v59  ;;  %v1134_v61 = vmul.f32 %v1133_v46, %v3150_v7  ;;  %v1497_v59 = vld [vmem:[#allocation11] sm:$0xff]  ;;  %v1500_v7 = vld [vmem:[#allocation11 + $0x18] sm:$0xff]  ;;  %v1608_v42 = vld [vmem:[#allocation13 + $0x88] sm:$0xff] }
 0x339   :  { %v2512_v47 = vpop.eup %2511  ;;  %v2373_v5 = vpack.c.bf16 %v1498_v4, %v1497_v59  ;;  %v1607_v41 = vld [vmem:[#allocation13 + $0x80] sm:$0xff]  ;;  %v1613_v59 = vld [vmem:[#allocation13 + $0xb0] sm:$0xff]  ;;  %v1614_v4 = vld [vmem:[#allocation13 + $0xb8] sm:$0xff] }
 0x33a   :  { %v742_v49 = vmul.f32 %v2512_v47, %v2504_v34  ;;  %v744_v51 = vmul.f32 %v2512_v47, %v2506_v36  ;;  %v747_v54 = vmul.f32 %v2512_v47, %v2508_v38  ;;  %v1129_v55 = vadd.f32 %v1128_v45, %v1126_v44  ;;  %v1591_v44 = vld [vmem:[#allocation13] sm:$0xff]  ;;  %v1592_v45 = vld [vmem:[#allocation13 + $0x8] sm:$0xff]  ;;  %v1609_v47 = vld [vmem:[#allocation13 + $0x90] sm:$0xff] }
 0x33b   :  { %v2396_v43 = vpack.c.bf16 %v1608_v42, %v1607_v41  ;;  %v2398_v46 = vpack.c.bf16 %v1592_v45, %v1591_v44  ;;  %v1631_v42 = vld [vmem:[#allocation13 + $0x140] sm:$0xff]  ;;  %v1633_v45 = vld [vmem:[#allocation13 + $0x150] sm:$0xff] }
 0x33c   :  { %v743_v56 = vmul.f32 %v742_v49, %v3138_v57  ;;  %v745_v58 = vmul.f32 %v744_v51, %v3143_v62  ;;  %v1132_v60 = vadd.f32 %v1131_v48, %v1129_v55  ;;  %v748_v53 = vmul.f32 %v747_v54, %v3145_v1  ;;  %v1499_v1 = vld [vmem:[#allocation11 + $0x10] sm:$0xff]  ;;  %v1610_v48 = vld [vmem:[#allocation13 + $0x98] sm:$0xff] }
 0x33d   :  { %v2376_v8 = vpack.c.bf16 %v1500_v7, %v1499_v1  ;;  %2397 = vmatprep.subr.bf16.mxu0 %v2396_v43  ;;  %v2400_v49 = vpack.c.bf16 %v1610_v48, %v1609_v47  ;;  %v1593_v51 = vld [vmem:[#allocation13 + $0x10] sm:$0xff]  ;;  %v1594_v54 = vld [vmem:[#allocation13 + $0x18] sm:$0xff]  ;;  %v1615_v1 = vld [vmem:[#allocation13 + $0xc0] sm:$0xff] }
 0x33e   :  { %v746_v63 = vadd.f32 %v745_v58, %v743_v56  ;;  %v3219_v2 = vadd.f32 %v1134_v61, %v1132_v60  ;;  %v2402_v55 = vpack.c.bf16 %v1594_v54, %v1593_v51  ;;  %v1611_v56 = vld [vmem:[#allocation13 + $0xa0] sm:$0xff]  ;;  %v1612_v58 = vld [vmem:[#allocation13 + $0xa8] sm:$0xff]  ;;  %v1637_v54 = vld [vmem:[#allocation13 + $0x170] sm:$0xff] }
 0x33f   :  { %v2404_v60 = vpack.c.bf16 %v1612_v58, %v1611_v56  ;;  %v1595_v61 = vld [vmem:[#allocation13 + $0x20] sm:$0xff]  ;;  %v1616_v7 = vld [vmem:[#allocation13 + $0xc8] sm:$0xff] }
 0x340   :  { %v3221_v3 = vadd.f32 %v748_v53, %v746_v63  ;;  %v1596_v63 = vld [vmem:[#allocation13 + $0x28] sm:$0xff]  ;;  %v1635_v48 = vld [vmem:[#allocation13 + $0x160] sm:$0xff] }
 0x341   :  { %v2406_v53 = vpack.c.bf16 %v1596_v63, %v1595_v61  ;;  %v1632_v43 = vld [vmem:[#allocation13 + $0x148] sm:$0xff] }
 0x342   :  { %2189 = vmatprep.mubr.f32.mxu0 %v3221_v3  ;;  %v2441_v44 = vpack.c.bf16 %v1632_v43, %v1631_v42  ;;  %v1798_v42 = vld [vmem:[#allocation14 + $0x58] sm:$0xff] }
 0x343   :  { %2190 = vmatmul.mubr.f32.vlgmr.msra.gmra.mrb[6].mxu0 %v3219_v2 }
 0x344   :  { %2399 = vmatpush3.bf16.msra.mxu0 %v2398_v46  ;;  %v1634_v46 = vld [vmem:[#allocation13 + $0x158] sm:$0xff] }
 0x345   :  { %2401 = vmatprep.subr.bf16.mxu0 %v2400_v49  ;;  %v2444_v47 = vpack.c.bf16 %v1634_v46, %v1633_v45  ;;  %v1636_v49 = vld [vmem:[#allocation13 + $0x168] sm:$0xff] }
 0x346   :  { %v2447_v51 = vpack.c.bf16 %v1636_v49, %v1635_v48  ;;  %v1800_v45 = vld [vmem:[#allocation14 + $0x68] sm:$0xff]  ;;  %v1802_v48 = vld [vmem:[#allocation14 + $0x78] sm:$0xff] }
 0x348   :  { %2403 = vmatpush3.bf16.msra.mxu0 %v2402_v55  ;;  %v1638_v55 = vld [vmem:[#allocation13 + $0x178] sm:$0xff] }
 0x349   :  { %2405 = vmatprep.subr.bf16.mxu0 %v2404_v60  ;;  %v2450_v56 = vpack.c.bf16 %v1638_v55, %v1637_v54 }
 0x34c   :  { %2407 = vmatpush3.bf16.msra.mxu0 %v2406_v53 }
 0x358   :  { %v1420_v57 = vpop.f32.mrb[16].mxu1 }
 0x359   :  { %v1424_v62 = vadd.f32 %v1420_v57, %v3154_v11  ;;  %v2201_v6 = vpop.f32.mrb[17].mxu1  ;;  %2203 = vmatpush3.msra.mxu1 %v1420_v57  ;;  %v2379_v11 = vpack.c.bf16 %v1502_v10, %v1501_v9  ;;  %v1597_v57 = vld [vmem:[#allocation13 + $0x30] sm:$0xff]  ;;  %v2412_v9 = vpack.c.bf16 %v1616_v7, %v1615_v1  ;;  %v1600_v10 = vld [vmem:[#allocation13 + $0x48] sm:$0xff] }
 0x35a   :  { %2205 = vmatmul.mubr.msk.f32.vlgmr.msra.gmra.mrb[18].mxu1 %vm1279_vm6, %v3128_v52  ;;  %2372 = vmatprep.subr.bf16.mxu1 %v2770_v17  ;;  %v2382_v52 = vpack.c.bf16 %v1504_v13, %v1503_v12  ;;  %v1618_v12 = vld [vmem:[#allocation13 + $0xd8] sm:$0xff] }
 0x35b   :  { %2374 = vmatpush3.bf16.msra.mxu1 %v2373_v5  ;;  %2239 = vmatprep.mubr.msk.f32.mxu1 %vm2768_vm0, %v2767_v0  ;;  %v2408_v5 = vpack.c.bf16 %v1614_v4, %v1613_v59 }
 0x35c   :  { %2375 = vmatprep.subr.bf16.mxu1 %v2770_v17 }
 0x35d   :  { %2409 = vmatprep.subr.bf16.mxu0 %v2408_v5 }
 0x35f   :  { %2377 = vmatpush3.bf16.msra.mxu1 %v2376_v8  ;;  %v1599_v8 = vld [vmem:[#allocation13 + $0x40] sm:$0xff] }
 0x360   :  { %2378 = vmatprep.subr.bf16.mxu1 %v2770_v17  ;;  %v2414_v13 = vpack.c.bf16 %v1600_v10, %v1599_v8 }
 0x363   :  { %2380 = vmatpush3.bf16.msra.mxu1 %v2379_v11  ;;  %v1617_v11 = vld [vmem:[#allocation13 + $0xd0] sm:$0xff] }
 0x364   :  { %2381 = vmatprep.subr.bf16.mxu1 %v2770_v17 }
 0x367   :  { %2383 = vmatpush3.bf16.msra.mxu1 %v2382_v52  ;;  %v2416_v52 = vpack.c.bf16 %v1618_v12, %v1617_v11 }
 0x368   :  { %2384 = vmatprep.subr.bf16.mxu1 %v2770_v17 }
 0x36b   :  { %2386 = vmatpush3.bf16.msra.mxu1 %v2385_v16  ;;  %v1619_v16 = vld [vmem:[#allocation13 + $0xe0] sm:$0xff] }
 0x36c   :  { %2387 = vmatprep.subr.bf16.mxu1 %v2770_v17  ;;  %v2420_v20 = vpack.c.bf16 %v1620_v18, %v1619_v16 }
 0x36f   :  { %2389 = vmatpush3.bf16.msra.mxu1 %v2388_v21  ;;  %v1603_v21 = vld [vmem:[#allocation13 + $0x60] sm:$0xff] }
 0x370   :  { %2390 = vmatprep.subr.bf16.mxu1 %v2770_v17  ;;  %v2422_v25 = vpack.c.bf16 %v1604_v22, %v1603_v21 }
 0x373   :  { %2392 = vmatpush3.bf16.msra.mxu1 %v2391_v23  ;;  %v1621_v23 = vld [vmem:[#allocation13 + $0xf0] sm:$0xff] }
 0x374   :  { %2393 = vmatprep.subr.bf16.mxu1 %v2770_v17 }
 0x377   :  { %2395 = vmatpush3.bf16.msra.mxu1 %v2394_v26  ;;  %v2424_v26 = vpack.c.bf16 %v1622_v24, %v1621_v23 }
 0x378   :  { %2428 = vmatprep.subr.bf16.mxu1 %v2770_v17 }
 0x416   :  { %v2191_v28 = vpop.f32.mrb[6].mxu0 }
 0x417   :  { %v1232_v29 = vadd.f32 %v2191_v28, %v1946_v27  ;;  %v1226_v30 = vpop.f32.mrb[7].mxu0  ;;  %v1606_v28 = vld [vmem:[#allocation13 + $0x78] sm:$0xff] }
 0x418   :  { %v1227_v31 = vadd.f32 %v1946_v27, %v1226_v30  ;;  %v1605_v27 = vld [vmem:[#allocation13 + $0x70] sm:$0xff]  ;;  %v1623_v30 = vld [vmem:[#allocation13 + $0x100] sm:$0xff] }
 0x419   :  { %2513 = vtanh.f32 %v1232_v29  ;;  %v2426_v29 = vpack.c.bf16 %v1606_v28, %v1605_v27 }
 0x41a   :  { %2515 = vtanh.f32 %v1227_v31  ;;  %v1624_v31 = vld [vmem:[#allocation13 + $0x108] sm:$0xff] }
 0x423   :  { %v2514_v33 = vpop.eup %2513 }
 0x424   :  { %v2516_v34 = vpop.eup %2515  ;;  %v1244_v35 = vmul.f32 %v2514_v33, %v1947_v32  ;;  %v2429_v33 = vpack.c.bf16 %v1624_v31, %v1623_v30  ;;  %v1787_v30 = vld [vmem:[#allocation14] sm:$0xff]  ;;  %v1789_v31 = vld [vmem:[#allocation14 + $0x10] sm:$0xff] }
 0x425   :  { %v1243_v36 = vmul.f32 %v2516_v34, %v1947_v32  ;;  %v1625_v32 = vld [vmem:[#allocation13 + $0x110] sm:$0xff]  ;;  %v1626_v34 = vld [vmem:[#allocation13 + $0x118] sm:$0xff] }
 0x426   :  { %1247 = vadd.xlane.f32.xlu0 %v1244_v35  ;;  %v2432_v35 = vpack.c.bf16 %v1626_v34, %v1625_v32  ;;  %v1790_v32 = vld [vmem:[#allocation14 + $0x18] sm:$0xff] }
 0x427   :  { %1245 = vadd.xlane.f32.xlu1 %v1243_v36  ;;  %v1627_v36 = vld [vmem:[#allocation13 + $0x120] sm:$0xff] }
 0x42d   :  { %v1491_v37 = vpop.f32.mrb[18].mxu1 }
 0x42e   :  { %v1495_v38 = vadd.f32 %v1491_v37, %v1424_v62  ;;  %v2206_v39 = vpop.f32.mrb[19].mxu1  ;;  %v1598_v62 = vld [vmem:[#allocation13 + $0x38] sm:$0xff]  ;;  %v1628_v37 = vld [vmem:[#allocation13 + $0x128] sm:$0xff] }
 0x42f   :  { %v2410_v6 = vpack.c.bf16 %v1598_v62, %v1597_v57  ;;  %v1629_v39 = vld [vmem:[#allocation13 + $0x130] sm:$0xff] }
 0x430   :  { %v1496_v40 = vmul.f32 0.33333334, %v1495_v38  ;;  %v2435_v38 = vpack.c.bf16 %v1628_v37, %v1627_v36  ;;  %v1794_v36 = vld [vmem:[#allocation14 + $0x38] sm:$0xff] }
 0x431   :  { %2411 = vmatpush3.bf16.msra.mxu0 %v2410_v6 }
 0x432   :  { %2240 = vmatmul.mubr.f32.vlgmr.msra.gmra.mrb[20].mxu1 %v1496_v40  ;;  %2413 = vmatprep.subr.bf16.mxu0 %v2412_v9  ;;  %v1630_v40 = vld [vmem:[#allocation13 + $0x138] sm:$0xff] }
 0x433   :  { %2274 = vmatprep.mubr.msk.f32.mxu1 %vm2768_vm0, %v2767_v0  ;;  %2430 = vmatpush3.bf16.msra.mxu1 %v2429_v33  ;;  %v2438_v41 = vpack.c.bf16 %v1630_v40, %v1629_v39  ;;  %v2456_v33 = vpack.c.bf16 %v1790_v32, %v1789_v31  ;;  %v1796_v39 = vld [vmem:[#allocation14 + $0x48] sm:$0xff] }
 0x434   :  { %2431 = vmatprep.subr.bf16.mxu1 %v2770_v17 }
 0x435   :  { %2415 = vmatpush3.bf16.msra.mxu0 %v2414_v13 }
 0x436   :  { %2417 = vmatprep.subr.bf16.mxu0 %v2416_v52 }
 0x437   :  { %2433 = vmatpush3.bf16.msra.mxu1 %v2432_v35  ;;  %v1793_v35 = vld [vmem:[#allocation14 + $0x30] sm:$0xff] }
 0x438   :  { %2434 = vmatprep.subr.bf16.mxu1 %v2770_v17  ;;  %v2462_v37 = vpack.c.bf16 %v1794_v36, %v1793_v35 }
 0x439   :  { %2419 = vmatpush3.bf16.msra.mxu0 %v2418_v19 }
 0x43a   :  { %2421 = vmatprep.subr.bf16.mxu0 %v2420_v20 }
 0x43b   :  { %2436 = vmatpush3.bf16.msra.mxu1 %v2435_v38  ;;  %v1795_v38 = vld [vmem:[#allocation14 + $0x40] sm:$0xff] }
 0x43c   :  { %2437 = vmatprep.subr.bf16.mxu1 %v2770_v17  ;;  %v2465_v40 = vpack.c.bf16 %v1796_v39, %v1795_v38 }
 0x43d   :  { %2423 = vmatpush3.bf16.msra.mxu0 %v2422_v25  ;;  %v1951_v25 = vld [vmem:[%s3317_s17] ss:$0 sm:$0xff] }
 0x43e   :  { %2425 = vmatprep.subr.bf16.mxu0 %v2424_v26 }
 0x43f   :  { %2439 = vmatpush3.bf16.msra.mxu1 %v2438_v41  ;;  %v1797_v41 = vld [vmem:[#allocation14 + $0x50] sm:$0xff] }
 0x440   :  { %2440 = vmatprep.subr.bf16.mxu1 %v2770_v17  ;;  %v2468_v43 = vpack.c.bf16 %v1798_v42, %v1797_v41 }
 0x441   :  { %2427 = vmatpush3.bf16.msra.mxu0 %v2426_v29 }
 0x442   :  { %2452 = vmatprep.subr.bf16.mxu0 %v2770_v17 }
 0x443   :  { %2442 = vmatpush3.bf16.msra.mxu1 %v2441_v44  ;;  %v1799_v44 = vld [vmem:[#allocation14 + $0x60] sm:$0xff] }
 0x444   :  { %2443 = vmatprep.subr.bf16.mxu1 %v2770_v17  ;;  %v2471_v46 = vpack.c.bf16 %v1800_v45, %v1799_v44 }
 0x447   :  { %2445 = vmatpush3.bf16.msra.mxu1 %v2444_v47  ;;  %v1801_v47 = vld [vmem:[#allocation14 + $0x70] sm:$0xff] }
 0x448   :  { %2446 = vmatprep.subr.bf16.mxu1 %v2770_v17  ;;  %v2474_v49 = vpack.c.bf16 %v1802_v48, %v1801_v47 }
 0x44b   :  { %2448 = vmatpush3.bf16.msra.mxu1 %v2447_v51 }
 0x44c   :  { %2449 = vmatprep.subr.bf16.mxu1 %v2770_v17 }
 0x44f   :  { %2451 = vmatpush3.bf16.msra.mxu1 %v2450_v56  ;;  %v1952_v56 = vld [vmem:[%s3320_s20] ss:$0 sm:$0xff] }
 0x4b3   :  { %v1248_v58 = vpop.xlane.xlu0 %1247 }
 0x4b4   :  { %v1256_v60 = vrot.slane %v1248_v58, 4  ;;  %v1246_v61 = vpop.xlane.xlu1 %1245 }
 0x4b5   :  { %v1249_v63 = vrot.slane %v1246_v61, 4 }
 0x4b6   :  { %v1257_v53 = vadd.f32 %v1256_v60, %v1248_v58 }
 0x4b7   :  { %v1250_v59 = vadd.f32 %v1249_v63, %v1246_v61 }
 0x4b8   :  { %v1258_v4 = vrot.slane %v1257_v53, 2 }
 0x4b9   :  { %v1251_v5 = vrot.slane %v1250_v59, 2 }
 0x4ba   :  { %v1259_v57 = vadd.f32 %v1258_v4, %v1257_v53 }
 0x4bb   :  { %v1252_v62 = vadd.f32 %v1251_v5, %v1250_v59 }
 0x4bc   :  { %v1260_v6 = vrot.slane %v1259_v57, 1 }
 0x4bd   :  { %v1253_v1 = vrot.slane %v1252_v62, 1 }
 0x4be   :  { %v1261_v7 = vadd.f32 %v1260_v6, %v1259_v57 }
 0x4bf   :  { %v1254_v8 = vadd.f32 %v1253_v1, %v1252_v62 }
 0x4c0   :  { %v1262_v9 = vmul.f32 0.125, %v1261_v7 }
 0x4c1   :  { %v1255_v10 = vmul.f32 0.125, %v1254_v8 }
 0x4c3   :  { %v1263_v11 = vmax.f32 %v1255_v10, %v1262_v9 }
 0x4c5   :  { %v1264_v12 = vsub.f32 %v1255_v10, %v1263_v11  ;;  %v1267_v13 = vsub.f32 %v1262_v9, %v1263_v11 }
 0x4c7   :  { %v1265_v52 = vmul.f32 1.442695, %v1264_v12  ;;  %v1268_v14 = vmul.f32 1.442695, %v1267_v13 }
 0x4c9   :  { %2517 = vpow2.f32 %v1265_v52 }
 0x4ca   :  { %2519 = vpow2.f32 %v1268_v14 }
 0x4d3   :  { %v2518_v15 = vpop.eup %2517 }
 0x4d4   :  { %v2520_v16 = vpop.eup %2519 }
 0x4d5   :  { %v1270_v18 = vadd.f32 %v2520_v16, %v2518_v15 }
 0x4d7   :  { %2521 = vrcp.f32 %v1270_v18 }
 0x4e1   :  { %v2522_v19 = vpop.eup %2521 }
 0x4e2   :  { %v1273_v20 = vmul.f32 %v2522_v19, %v2518_v15  ;;  %v1275_v21 = vmul.f32 %v2522_v19, %v2520_v16 }
 0x4e4   :  { %v1274_v22 = vmul.f32 %v1273_v20, %v3221_v3  ;;  %v1276_v23 = vmul.f32 %v1275_v21, %v3219_v2  ;;  %v1788_v3 = vld [vmem:[#allocation14 + $0x8] sm:$0xff] }
 0x4e5   :  { %v2453_v2 = vpack.c.bf16 %v1788_v3, %v1787_v30 }
 0x4e6   :  { %v1277_v24 = vadd.f32 %v1276_v23, %v1274_v22 }
 0x4e8   :  { %1710 = vmatprep.mubr.f32.mxu0 %v1277_v24 }
 0x4e9   :  { %1711 = vmatmul.mubr.f32.vlgmr.msra.gmra.mrb[8].mxu0 %v3118_v50  ;;  %v1791_v50 = vld [vmem:[#allocation14 + $0x20] sm:$0xff] }
 0x4ea   :  { %2309 = vmatprep.mubr.msk.f32.mxu0 %vm2768_vm0, %v2767_v0  ;;  %2454 = vmatpush3.bf16.msra.mxu0 %v2453_v2  ;;  %v1792_v0 = vld [vmem:[#allocation14 + $0x28] sm:$0xff] }
 0x4eb   :  { %2455 = vmatprep.subr.bf16.mxu0 %v2770_v17  ;;  %v2459_v34 = vpack.c.bf16 %v1792_v0, %v1791_v50 }
 0x4ee   :  { %2457 = vmatpush3.bf16.msra.mxu0 %v2456_v33 }
 0x4ef   :  { %2458 = vmatprep.subr.bf16.mxu0 %v2770_v17 }
 0x4f2   :  { %2460 = vmatpush3.bf16.msra.mxu0 %v2459_v34 }
 0x4f3   :  { %2461 = vmatprep.subr.bf16.mxu0 %v2770_v17 }
 0x4f6   :  { %2463 = vmatpush3.bf16.msra.mxu0 %v2462_v37 }
 0x4f7   :  { %2464 = vmatprep.subr.bf16.mxu0 %v2770_v17 }
 0x4fa   :  { %2466 = vmatpush3.bf16.msra.mxu0 %v2465_v40 }
 0x4fb   :  { %2467 = vmatprep.subr.bf16.mxu0 %v2770_v17 }
 0x4fe   :  { %2469 = vmatpush3.bf16.msra.mxu0 %v2468_v43 }
 0x4ff   :  { %2470 = vmatprep.subr.bf16.mxu0 %v2770_v17 }
 0x502   :  { %2472 = vmatpush3.bf16.msra.mxu0 %v2471_v46 }
 0x503   :  { %2473 = vmatprep.subr.bf16.mxu0 %v2770_v17 }
 0x505   :  { %v1586_v26 = vpop.f32.mrb[20].mxu1 }
 0x506   :  { %v1587_v27 = vadd.f32 %v1951_v25, %v1586_v26  ;;  %v2241_v28 = vpop.f32.mrb[21].mxu1  ;;  %2475 = vmatpush3.bf16.msra.mxu0 %v2474_v49 }
 0x508   :  { %v1590_v29 = vmax.f32 %v1587_v27, 0.0 }
 0x50a   :  { %2275 = vmatmul.mubr.f32.vlgmr.msra.gmra.mrb[22].mxu1 %v1590_v29 }
 0x5bc   :  { %v2056_v51 = vpop.f32.mrb[8].mxu0 }
 0x5bd   :  { %v2057_v54 = vpop.f32.mrb[9].mxu0 }
 0x5be   :  { %v2058_v55 = vadd.f32 %v2057_v54, %v2056_v51 }
 0x5c0   :  { %v1713_v58 = vadd.f32 %v2058_v55, %v1952_v56 }
 0x5dd   :  { %v1782_v60 = vpop.f32.mrb[22].mxu1 }
 0x5de   :  { %v1783_v61 = vadd.f32 %v1782_v60, %v1713_v58  ;;  %v2276_v63 = vpop.f32.mrb[23].mxu1 }
 0x5e0   :  { %1786 = vst [vmem:[#allocation17] sm:$0xff] %v1783_v61  ;;  %2310 = vmatmul.mubr.f32.vlgmr.msra.gmra.mrb[10].mxu0 %v1783_v61 }
 0x5e1   :  { %2710 = shalt.err (!%p2707_p12)
}
 0x5e2   :  { %s2711_s20 = scalar_lea.hbm %s3324_s24, 128 }
 0x5e3   :  { %p2712_p13 = scmp.ne.s32.totalorder %s3324_s24, %s2711_s20  ;;  %p2715_p0 = scmp.lt.u32.totalorder %s2711_s20, %s3324_s24 }
 0x5e5   :  { %p2717_p1 = pnand %p2715_p0, %p2712_p13 }
 0x5e7   :  { %2720 = shalt.err (!%p2717_p1)
}
 0x5e8   :  { %1900 = dma.vmem_to_hbm [thread:$0]  %s1898_s0, 128, %s3324_s24, [#allocation18]   ;;  %v1953_v17 = vld [vmem:[%s3322_s22] ss:$0 sm:$0xff] }
 0x5e9   :  { %s2773_s2 = smov [#allocation16]  }
 0x5ea   :  { %s1887_s1 = sshll.u32 %s2773_s2, 4  ;;  %s1888_s1 = int_to_ptr.vmem [resolvable:$true] %s1887_s1 }
 0x5eb   :  { %s2721_s8 = scalar_lea.vmem %s1888_s1, 128  ;;  %p2726_p3 = scmp.lt.s32.totalorder %s1888_s1, %s1888_s1 }
 0x5ec   :  { %p2722_p2 = scmp.ne.s32.totalorder %s1888_s1, %s2721_s8  ;;  %p2727_p4 = scmp.lt.s32.totalorder %s2721_s8, %s2721_s8 }
 0x5ee   :  { %p2728_p5 = por %p2727_p4, %p2726_p3 }
 0x5f0   :  { %p2729_p6 = pnand %p2728_p5, %p2722_p2 }
 0x6b3   :  { %v1876_v53 = vpop.f32.mrb[10].mxu0 }
 0x6b4   :  { %v1877_v59 = vadd.f32 %v1953_v17, %v1876_v53  ;;  %v2311_v4 = vpop.f32.mrb[11].mxu0 }
 0x6b6   :  { %1880 = vst [vmem:[#allocation16] sm:$0xff] %v1877_v59 }
 0x6b7   :  { %2732 = shalt.err (!%p2729_p6)
}
 0x6b8   :  { %s3354_s19 = sld [smem:[#allocation35_spill]] }
 0x6be   :  { %s2733_s26 = scalar_lea.hbm %s3354_s19, 128 }
 0x6bf   :  { %p2734_p7 = scmp.ne.s32.totalorder %s3354_s19, %s2733_s26  ;;  %p2737_p8 = scmp.lt.u32.totalorder %s2733_s26, %s3354_s19 }
 0x6c1   :  { %p2739_p9 = pnand %p2737_p8, %p2734_p7 }
 0x6c3   :  { %2742 = shalt.err (!%p2739_p9)
}
 0x6c4   :  { %1890 = dma.vmem_to_hbm [thread:$0]  %s1888_s1, 128, %s3354_s19, [#allocation4]  }
 0x6c5   :  { %2753 = dma.done.wait [#allocation4], 128  }
 0x6c6   :  { %2754 = vsyncadd [#allocation4], 4294967168 }
 0x6c7   :  { %2755 = dma.done.wait [#allocation18], 128  }
 0x6c8   :  { %2756 = vsyncadd [#allocation18], 4294967168 }
 0x6c9   :  { %1907 = vsyncpa [#allocation3], 1 }
 0x6ca   :  { %1908 = vsyncpa [#allocation6], 1 }
 0x6cb   :  { %1909 = vsyncpa [#allocation9], 1 }
 0x6cc   :  { %1910 = vsyncpa [#allocation12], 1 }
 0x6cd   :  { %1911 = vsyncpa [#allocation15], 1 }
 0x6ce   :  { %1912 = vsyncpa [#allocation4], 1 }
 0x6cf   :  { %1913 = vsyncpa [#allocation18], 1 }

</bundles_post_ra>
